<compile_context>
chip_gen: v5e
topology: v5e:2x2
jax: 0.10.0
libtpu: 0.0.40
codegen_flags: <defaults>
</compile_context>

<pallas_src>
import functools

import jax
import jax.numpy as jnp
from jax.experimental import pallas as pl
from jax.experimental.pallas import tpu as pltpu


# ----------------------------- small helpers ------------------------------- #

def _round_up(a, m):
    return (a + m - 1) // m * m


@functools.lru_cache(maxsize=None)
def _vmem_limit_bytes():
    """Scoped-VMEM budget derived from the actual chip (64 MiB v7x, 128 MiB v5e/v6e)."""
    cap = 64 * 1024 * 1024          # v7x-safe fallback if the query is unavailable
    try:
        cap = int(pltpu.get_tpu_info().vmem_capacity_bytes)
    except Exception:
        pass
    return int(min(cap * 3 // 4, 96 * 1024 * 1024))


def _plan_cols(n, col_bytes, budget):
    """Pick (n_pad, tile, num_tiles): the biggest lane-dense (multiple-of-128) column
    tile whose double-buffered streamed blocks fit `budget` bytes, minimal padding."""
    n128 = _round_up(max(int(n), 1), 128)
    max_cols = max(128, (budget // max(2 * col_bytes, 1)) // 128 * 128)
    if n128 <= max_cols:
        return n128, n128, 1
    k = -(-n128 // max_cols)
    tn = _round_up(-(-n128 // k), 128)
    return tn * k, tn, k


def _pad_cols(x, n_pad):
    n = x.shape[-1]
    if n == n_pad:
        return x
    return jnp.pad(x, [(0, 0)] * (x.ndim - 1) + [(0, n_pad - n)])


def _mosaic(dims):
    return pltpu.CompilerParams(dimension_semantics=dims,
                                vmem_limit_bytes=_vmem_limit_bytes())


# ----------------------------- Pallas kernels ------------------------------ #

def _phi_kernel(g_ref, w_ref, b_ref, o_ref):
    # 1x1x1 conv on g: (Ci,Cg)@(Cg,tn) + (Ci,1) -> (Ci,tn); lane axis = positions.
    o_ref[0] = jnp.dot(w_ref[...], g_ref[0],
                       preferred_element_type=jnp.float32) + b_ref[...]


def _att_kernel(xsd_ref, wth_ref, phig_ref, wpsi_ref, bpsi_ref, o_ref):
    # theta conv (stride==kernel -> matmul over space-to-depth patches), + phi, ReLU,
    # psi as VPU multiply + sublane reduce (lane-dense (1,tn) output), sigmoid.
    theta = jnp.dot(wth_ref[...], xsd_ref[0],
                    preferred_element_type=jnp.float32)                    # (Ci, tn)
    f = jnp.maximum(theta + phig_ref[0].astype(jnp.float32), 0.0)
    s = jnp.sum(f * wpsi_ref[...], axis=0, keepdims=True) + bpsi_ref[0]    # (1, tn)
    o_ref[0] = jax.nn.sigmoid(s)


def _wbn_fused_kernel(x_ref, att_ref, w_ref, gam_ref, bet_ref, o_ref, sum_sc,
                      *, n_valid, pad_cols, eps, tn):
    # Output block == full (B, C, Np) array -> VMEM-resident across the whole grid.
    # Sweep: write wy tiles into it and accumulate per-channel sums; at the last grid
    # step compute a *centered* variance from the resident wy and normalize in place.
    b, i = pl.program_id(0), pl.program_id(1)

    @pl.when((b == 0) & (i == 0))
    def _init():
        sum_sc[...] = jnp.zeros_like(sum_sc)

    # Elementwise math in f32 (v5e has no bf16 VPU); MXU accumulates in f32.
    y = x_ref[0].astype(jnp.float32) * att_ref[0].astype(jnp.float32)       # (C, tn)
    wy = jnp.dot(w_ref[...], y, preferred_element_type=jnp.float32)         # (C, tn)
    sum_sc[...] += jnp.sum(wy, axis=1, keepdims=True)                       # (C, 1)

    col = pl.multiple_of(i * tn, 128)
    o_ref[b, :, pl.ds(col, tn)] = wy.astype(o_ref.dtype)                    # stash wy

    @pl.when((b == pl.num_programs(0) - 1) & (i == pl.num_programs(1) - 1))
    def _finalize():
        inv_n = 1.0 / n_valid
        mean = (sum_sc[...] * inv_n)[None]                                  # (1, C, 1)
        wy_all = o_ref[...].astype(jnp.float32)                             # (B, C, Np)
        cent = wy_all - mean
        ssq = jnp.sum(jnp.sum(cent * cent, axis=2, keepdims=True),
                      axis=0, keepdims=True)                                # (1, C, 1)
        if pad_cols:   # zero-padded columns contributed (0 - mean)^2 each; remove.
            ssq = ssq - float(pad_cols) * (mean * mean)
        var = jnp.maximum(ssq * inv_n, 0.0)
        scale = gam_ref[...][None] * jax.lax.rsqrt(var + eps)               # (1, C, 1)
        shift = bet_ref[...][None] - mean * scale
        o_ref[...] = (wy_all * scale + shift).astype(o_ref.dtype)


def _wbn_stats_kernel(x_ref, att_ref, w_ref, sum_ref, sq_ref, acc_s, acc_q):
    # Streaming fallback, pass 1: per-batch partial sum / sum-of-squares of W@(att*x).
    # Padded columns of x/att are zero, so they contribute nothing (no mask needed).
    i = pl.program_id(1)

    @pl.when(i == 0)
    def _init():
        acc_s[...] = jnp.zeros_like(acc_s)
        acc_q[...] = jnp.zeros_like(acc_q)

    y = x_ref[0].astype(jnp.float32) * att_ref[0].astype(jnp.float32)
    wy = jnp.dot(w_ref[...], y, preferred_element_type=jnp.float32)
    acc_s[...] += jnp.sum(wy, axis=1, keepdims=True)
    acc_q[...] += jnp.sum(wy * wy, axis=1, keepdims=True)

    @pl.when(i == pl.num_programs(1) - 1)
    def _fin():
        sum_ref[0] = acc_s[...]
        sq_ref[0] = acc_q[...]


def _wbn_apply_kernel(x_ref, att_ref, w_ref, scale_ref, shift_ref, o_ref):
    # Streaming fallback, pass 2: recompute the tiny W matmul and apply the folded BN.
    y = x_ref[0].astype(jnp.float32) * att_ref[0].astype(jnp.float32)
    wy = jnp.dot(w_ref[...], y, preferred_element_type=jnp.float32)
    o_ref[0] = (wy * scale_ref[...] + shift_ref[...]).astype(o_ref.dtype)


# ------------------------------- wrappers ----------------------------------- #

def phi_conv(g3, w, b, *, io_dtype=jnp.float32):
    """1x1x1 conv on g, batch kept: (B, Cg, Ng) -> (B, Ci, Ng) f32."""
    B, Cg, Ng = g3.shape
    Ci = w.shape[0]
    isz = jnp.dtype(io_dtype).itemsize
    col_bytes = (Cg + 8) * isz + (Ci + 8) * 4
    n_pad, tn, k = _plan_cols(Ng, col_bytes, _vmem_limit_bytes() // 4)
    g_p = _pad_cols(g3, n_pad).astype(io_dtype)
    out = pl.pallas_call(
        _phi_kernel,
        out_shape=jax.ShapeDtypeStruct((B, Ci, n_pad), jnp.float32),
        grid=(B, k),
        in_specs=[pl.BlockSpec((1, Cg, tn), lambda b, i: (b, 0, i)),
                  pl.BlockSpec((Ci, Cg), lambda b, i: (0, 0)),
                  pl.BlockSpec((Ci, 1), lambda b, i: (0, 0))],
        out_specs=pl.BlockSpec((1, Ci, tn), lambda b, i: (b, 0, i)),
        compiler_params=_mosaic(("parallel", "parallel")),
    )(g_p, w.astype(io_dtype), b.astype(jnp.float32))
    return out[:, :, :Ng]


def att_conv(x_sd, w_theta, phi_g, w_psi, b_psi, *, io_dtype=jnp.float32):
    """Fused theta-conv + add(phi_g) + ReLU + psi + sigmoid -> (B, 1, Nt) f32."""
    B, K, Nt = x_sd.shape
    Ci = w_theta.shape[0]
    isz = jnp.dtype(io_dtype).itemsize
    col_bytes = (K + 8) * isz + (Ci + 8) * 4 + 8 * 4
    n_pad, tn, k = _plan_cols(Nt, col_bytes, _vmem_limit_bytes() // 4)
    x_p = _pad_cols(x_sd, n_pad).astype(io_dtype)
    p_p = _pad_cols(phi_g, n_pad).astype(jnp.float32)
    out = pl.pallas_call(
        _att_kernel,
        out_shape=jax.ShapeDtypeStruct((B, 1, n_pad), jnp.float32),
        grid=(B, k),
        in_specs=[pl.BlockSpec((1, K, tn), lambda b, i: (b, 0, i)),
                  pl.BlockSpec((Ci, K), lambda b, i: (0, 0)),
                  pl.BlockSpec((1, Ci, tn), lambda b, i: (b, 0, i)),
                  pl.BlockSpec((Ci, 1), lambda b, i: (0, 0)),
                  pl.BlockSpec(memory_space=pltpu.MemorySpace.SMEM)],   # psi bias scalar
        out_specs=pl.BlockSpec((1, 1, tn), lambda b, i: (b, 0, i)),
        compiler_params=_mosaic(("parallel", "parallel")),
    )(x_p, w_theta.astype(io_dtype), p_p,
      w_psi.astype(jnp.float32), b_psi.astype(jnp.float32))
    return out[:, :, :Nt]


def wconv_bn(x3, att3, w, gamma, beta, *, eps=1e-5, io_dtype=jnp.float32,
             out_dtype=None, mode="auto"):
    """Fused y = att*x ; wy = W@y ; BatchNorm (training statistics).

    x3: (B, C, N), att3: (B, 1, N) -> (B, C, N) in out_dtype.
    mode: "auto" | "fused" (VMEM-resident single call) | "twopass" (streaming).
    The W-conv bias is folded away (it cancels under training-mode BatchNorm).
    """
    B, C, N = x3.shape
    out_dtype = io_dtype if out_dtype is None else out_dtype
    io_b = jnp.dtype(io_dtype).itemsize
    out_b = jnp.dtype(out_dtype).itemsize
    budget = _vmem_limit_bytes()
    col_bytes = (C + 8) * io_b + C * out_b
    n_pad, tn, k = _plan_cols(N, col_bytes, budget // 4)

    x_p = _pad_cols(x3, n_pad).astype(io_dtype)
    a_p = _pad_cols(att3, n_pad).astype(io_dtype)
    w32 = w.astype(jnp.float32)
    gam = gamma.reshape(C, 1).astype(jnp.float32)
    bet = beta.reshape(C, 1).astype(jnp.float32)
    n_valid = float(B * N)

    resident = B * C * n_pad * out_b
    use_fused = (mode == "fused") or (
        mode == "auto" and resident <= min(budget // 4, 4 * 1024 * 1024))

    if use_fused:
        out = pl.pallas_call(
            functools.partial(_wbn_fused_kernel, n_valid=n_valid,
                              pad_cols=B * (n_pad - N), eps=eps, tn=tn),
            out_shape=jax.ShapeDtypeStruct((B, C, n_pad), out_dtype),
            grid=(B, k),
            in_specs=[pl.BlockSpec((1, C, tn), lambda b, i: (b, 0, i)),
                      pl.BlockSpec((1, 1, tn), lambda b, i: (b, 0, i)),
                      pl.BlockSpec((C, C), lambda b, i: (0, 0)),
                      pl.BlockSpec((C, 1), lambda b, i: (0, 0)),
                      pl.BlockSpec((C, 1), lambda b, i: (0, 0))],
            # Output block == full array -> stays resident in VMEM, written back once.
            out_specs=pl.BlockSpec((B, C, n_pad), lambda b, i: (0, 0, 0)),
            scratch_shapes=[pltpu.VMEM((C, 1), jnp.float32)],
            compiler_params=_mosaic(("arbitrary", "arbitrary")),
        )(x_p, a_p, w32, gam, bet)
        return out[:, :, :N]

    # Streaming two-pass fallback (single-pass E[x^2]-E[x]^2 variance in f32).
    # TODO(synk): Welford / two-sweep centering if cancellation ever becomes an issue.
    ssum, ssq = pl.pallas_call(
        _wbn_stats_kernel,
        out_shape=(jax.ShapeDtypeStruct((B, C, 1), jnp.float32),
                   jax.ShapeDtypeStruct((B, C, 1), jnp.float32)),
        grid=(B, k),
        in_specs=[pl.BlockSpec((1, C, tn), lambda b, i: (b, 0, i)),
                  pl.BlockSpec((1, 1, tn), lambda b, i: (b, 0, i)),
                  pl.BlockSpec((C, C), lambda b, i: (0, 0))],
        out_specs=(pl.BlockSpec((1, C, 1), lambda b, i: (b, 0, 0)),
                   pl.BlockSpec((1, C, 1), lambda b, i: (b, 0, 0))),
        scratch_shapes=[pltpu.VMEM((C, 1), jnp.float32),
                        pltpu.VMEM((C, 1), jnp.float32)],
        compiler_params=_mosaic(("parallel", "arbitrary")),   # batch -> v7x megacore
    )(x_p, a_p, w32)

    s = jnp.sum(ssum, axis=0)                         # (C, 1)
    q = jnp.sum(ssq, axis=0)
    mean = s / n_valid
    var = jnp.maximum(q / n_valid - mean * mean, 0.0)
    scale = gam * jax.lax.rsqrt(var + eps)
    shift = bet - mean * scale

    out = pl.pallas_call(
        _wbn_apply_kernel,
        out_shape=jax.ShapeDtypeStruct((B, C, n_pad), out_dtype),
        grid=(B, k),
        in_specs=[pl.BlockSpec((1, C, tn), lambda b, i: (b, 0, i)),
                  pl.BlockSpec((1, 1, tn), lambda b, i: (b, 0, i)),
                  pl.BlockSpec((C, C), lambda b, i: (0, 0)),
                  pl.BlockSpec((C, 1), lambda b, i: (0, 0)),
                  pl.BlockSpec((C, 1), lambda b, i: (0, 0))],
        out_specs=pl.BlockSpec((1, C, tn), lambda b, i: (b, 0, i)),
        compiler_params=_mosaic(("parallel", "parallel")),
    )(x_p, a_p, w32, scale, shift)
    return out[:, :, :N]


# ------------------------------- JAX glue ----------------------------------- #

def _resize_axis(x, axis, out_size):
    """1D linear resize along `axis`, PyTorch align_corners=False semantics."""
    in_size = x.shape[axis]
    if in_size == out_size:
        return x
    scale = in_size / out_size
    dst = jnp.arange(out_size, dtype=jnp.float32)
    src = jnp.maximum((dst + 0.5) * scale - 0.5, 0.0)
    i0 = jnp.clip(jnp.floor(src).astype(jnp.int32), 0, in_size - 1)
    i1 = jnp.minimum(i0 + 1, in_size - 1)
    w1 = src - i0.astype(jnp.float32)
    w0 = 1.0 - w1
    x0 = jnp.take(x, i0, axis=axis)
    x1 = jnp.take(x, i1, axis=axis)
    shp = [1] * x.ndim
    shp[axis] = out_size
    return x0 * w0.reshape(shp) + x1 * w1.reshape(shp)


def trilinear_resize(x, out_size):
    """x: (B, C, T, H, W) -> resized on axes 2,3,4; trilinear, align_corners=False."""
    for ax, sz in zip((2, 3, 4), out_size):
        x = _resize_axis(x, ax, sz)
    return x


def init_params(key, in_c, gating_c, inter_c):
    ks = jax.random.split(key, 8)

    def kaiming(k, shape, fan_in):
        return jax.random.normal(k, shape, jnp.float32) * jnp.sqrt(2.0 / fan_in)

    return dict(
        theta_w=kaiming(ks[0], (inter_c, in_c, 2, 2, 2), in_c * 8),
        phi_w=kaiming(ks[1], (inter_c, gating_c, 1, 1, 1), gating_c),
        phi_b=jax.random.uniform(ks[2], (inter_c,), jnp.float32, -1.0, 1.0)
              / jnp.sqrt(gating_c),
        psi_w=kaiming(ks[3], (1, inter_c, 1, 1, 1), inter_c),
        psi_b=jax.random.uniform(ks[4], (1,), jnp.float32, -1.0, 1.0)
              / jnp.sqrt(inter_c),
        W_w=kaiming(ks[5], (in_c, in_c, 1, 1, 1), in_c),
        W_b=jax.random.uniform(ks[6], (in_c,), jnp.float32, -1.0, 1.0)
            / jnp.sqrt(in_c),
        bn_gamma=1.0 + 0.02 * jax.random.normal(ks[7], (in_c,), jnp.float32),
        bn_beta=jnp.zeros((in_c,), jnp.float32),
    )


def grid_attention_forward(x, g, params, *, io_dtype=jnp.float32, out_dtype=None,
                           wbn_mode="auto"):
    """x: (B, C, T, H, W); g: (B, Cg, Tg, Hg, Wg). Returns (W_y, sigm_psi_f).

    io_dtype=jnp.bfloat16 halves HBM/VMEM traffic (all elementwise math, MXU
    accumulation and BN statistics stay in f32).
    """
    B, C, T, H, W = x.shape
    Bg, Cg, Tg, Hg, Wg = g.shape
    assert B == Bg
    Ci = params["theta_w"].shape[0]
    st = sh = sw = 2
    assert T % st == 0 and H % sh == 0 and W % sw == 0
    To, Ho, Wo = T // st, H // sh, W // sw
    Nb, Ntb, Ngb = T * H * W, To * Ho * Wo, Tg * Hg * Wg

    # --- phi(g): 1x1x1 conv; (B, Cg, Ngb) reshape is free (batch kept) ---
    phi = phi_conv(g.reshape(B, Cg, Ngb), params["phi_w"].reshape(Ci, Cg),
                   params["phi_b"].reshape(Ci, 1), io_dtype=io_dtype)      # (B, Ci, Ngb)
    phi_up = trilinear_resize(phi.reshape(B, Ci, Tg, Hg, Wg),
                              (To, Ho, Wo)).reshape(B, Ci, Ntb)

    # --- theta(x): stride==kernel (2,2,2) conv as space-to-depth + matmul, fused with
    #     add(phi) + ReLU + psi + sigmoid.  This is the one remaining host copy of x.
    # TODO(synk): fold the 8 patch offsets into the att kernel (in-kernel strided
    #             gather) so the space-to-depth transpose disappears too.
    xb = x.reshape(B, C, To, st, Ho, sh, Wo, sw)
    x_sd = jnp.transpose(xb, (0, 1, 3, 5, 7, 2, 4, 6)).reshape(B, C * 8, Ntb)
    sigm = att_conv(x_sd, params["theta_w"].reshape(Ci, C * 8), phi_up,
                    params["psi_w"].reshape(Ci, 1), params["psi_b"].reshape(1),
                    io_dtype=io_dtype)                                      # (B, 1, Ntb)

    # --- upsample attention map back to the input resolution (returned in f32) ---
    sig_up = trilinear_resize(sigm.reshape(B, 1, To, Ho, Wo), (T, H, W))    # (B,1,T,H,W)
    # TODO(synk): fuse this 1-channel trilinear upsample into the W/BN kernel via
    #             scalar-prefetched corner indices to avoid the full-res HBM round-trip.

    # --- y = sigm*x ; W_y = BN(Conv1x1x1(y)); batch-kept layout, reshapes are free ---
    out3 = wconv_bn(x.reshape(B, C, Nb), sig_up.reshape(B, 1, Nb),
                    params["W_w"].reshape(C, C), params["bn_gamma"], params["bn_beta"],
                    io_dtype=io_dtype, out_dtype=out_dtype, mode=wbn_mode)  # (B, C, Nb)

    return out3.reshape(B, C, T, H, W), sig_up


# ---------------------------- pure-JAX reference ----------------------------- #

def reference_forward(x, g, params, eps=1e-5):
    B, C, T, H, W = x.shape
    Ci = params["theta_w"].shape[0]
    dn = ("NCDHW", "OIDHW", "NCDHW")
    theta = jax.lax.conv_general_dilated(x, params["theta_w"], (2, 2, 2), "VALID",
                                         dimension_numbers=dn)
    phi = jax.lax.conv_general_dilated(g, params["phi_w"], (1, 1, 1), "VALID",
                                       dimension_numbers=dn) \
          + params["phi_b"].reshape(1, Ci, 1, 1, 1)
    phi_up = trilinear_resize(phi, theta.shape[2:])
    f = jnp.maximum(theta + phi_up, 0.0)
    psi = jnp.einsum("bcdhw,c->bdhw", f, params["psi_w"].reshape(Ci))[:, None] \
          + params["psi_b"].reshape(1, 1, 1, 1, 1)
    sig = jax.nn.sigmoid(psi)
    sig_up = trilinear_resize(sig, (T, H, W))
    y = sig_up * x
    wy = jnp.einsum("bcdhw,oc->bodhw", y, params["W_w"].reshape(C, C)) \
         + params["W_b"].reshape(1, C, 1, 1, 1)
    mean = wy.mean(axis=(0, 2, 3, 4), keepdims=True)
    var = wy.var(axis=(0, 2, 3, 4), keepdims=True)
    out = (wy - mean) * jax.lax.rsqrt(var + eps) * params["bn_gamma"].reshape(1, C, 1, 1, 1) \
          + params["bn_beta"].reshape(1, C, 1, 1, 1)
    return out, sig_up


# --------------------------------- main -------------------------------------- #

if __name__ == "__main__":
    key = jax.random.PRNGKey(0)
    kx, kg, kp = jax.random.split(key, 3)

    B, C, T, H, W = 2, 4, 16, 16, 16        # x: (b, in_channels, t, h, w)
    Cg = 8                                   # gating_channels
    inter_c = max(C // 2, 1)                 # inter_channels default = in_channels // 2
    Tg = Hg = Wg = 8                         # gating spatial size

    x = jax.random.normal(kx, (B, C, T, H, W), jnp.float32)
    g = jax.random.normal(kg, (B, Cg, Tg, Hg, Wg), jnp.float32)
    params = init_params(kp, C, Cg, inter_c)

    W_y_ref, sig_ref = reference_forward(x, g, params)

    # f32 I/O, fused (VMEM-resident) W/BN path
    fwd = jax.jit(functools.partial(grid_attention_forward, io_dtype=jnp.float32))
    W_y, sig = fwd(x, g, params)
    jax.block_until_ready((W_y, sig))
    assert W_y.shape == (B, C, T, H, W) and sig.shape == (B, 1, T, H, W)
    assert bool(jnp.all(jnp.isfinite(W_y)))
    assert bool(jnp.all((sig >= 0.0) & (sig <= 1.0)))
    assert bool(jnp.allclose(sig, sig_ref, atol=2e-3, rtol=2e-3)), \
        float(jnp.max(jnp.abs(sig - sig_ref)))
    assert bool(jnp.allclose(W_y, W_y_ref, atol=2e-3, rtol=2e-3)), \
        float(jnp.max(jnp.abs(W_y - W_y_ref)))

    # f32 I/O, streaming two-pass W/BN path (large-N fallback, exercised explicitly)
    fwd_tp = jax.jit(functools.partial(grid_attention_forward, io_dtype=jnp.float32,
                                       wbn_mode="twopass"))
    W_y_tp, _ = fwd_tp(x, g, params)
    jax.block_until_ready(W_y_tp)
    assert bool(jnp.allclose(W_y_tp, W_y_ref, atol=2e-3, rtol=2e-3)), \
        float(jnp.max(jnp.abs(W_y_tp - W_y_ref)))

    # bf16 I/O path (halves HBM traffic on v5e/v6e/v7x) -- looser tolerance
    fwd_bf = jax.jit(functools.partial(grid_attention_forward, io_dtype=jnp.bfloat16))
    W_y_bf, sig_bf = fwd_bf(x, g, params)
    jax.block_until_ready((W_y_bf, sig_bf))
    W_y_bf32 = W_y_bf.astype(jnp.float32)
    assert bool(jnp.all(jnp.isfinite(W_y_bf32)))
    assert bool(jnp.all((sig_bf >= 0.0) & (sig_bf <= 1.0)))
    bf_err = float(jnp.max(jnp.abs(W_y_bf32 - W_y_ref)))
    assert bf_err < 0.25, bf_err

    print("KERNEL_OK")
</pallas_src>

<mosaic_0001>
module attributes {stable_mosaic.version = 11 : i64} {
  func.func @_phi_kernel(%arg0: i32, %arg1: i32, %arg2: memref<1x8x512xf32, #tpu.memory_space<vmem>>, %arg3: memref<2x8xf32, #tpu.memory_space<vmem>>, %arg4: memref<2x1xf32, #tpu.memory_space<vmem>>, %arg5: memref<1x2x512xf32, #tpu.memory_space<vmem>>) attributes {dimension_semantics = [#tpu.dimension_semantics<parallel>, #tpu.dimension_semantics<parallel>], iteration_bounds = array<i64: 2, 1>, scalar_prefetch = 0 : i64, scratch_operands = 0 : i64, tpu.core_type = #tpu.core_type<tc>, window_params = [{transform_indices = @transform_0, window_bounds = array<i64: 1, 8, 512>}, {pipeline_mode = #tpu.pipeline_mode<synchronous>, transform_indices = @transform_1, window_bounds = array<i64: 2, 8>}, {pipeline_mode = #tpu.pipeline_mode<synchronous>, transform_indices = @transform_2, window_bounds = array<i64: 2, 1>}, {transform_indices = @transform_3, window_bounds = array<i64: 1, 2, 512>}]} {
    %c0 = arith.constant 0 : index
    %c0_0 = arith.constant 0 : index
    %0 = vector.load %arg3[%c0, %c0_0] : memref<2x8xf32, #tpu.memory_space<vmem>>, vector<2x8xf32>
    %c0_1 = arith.constant 0 : index
    %c0_2 = arith.constant 0 : index
    %c0_3 = arith.constant 0 : index
    %1 = vector.load %arg2[%c0_1, %c0_2, %c0_3] : memref<1x8x512xf32, #tpu.memory_space<vmem>>, vector<1x8x512xf32>
    %2 = vector.shape_cast %1 : vector<1x8x512xf32> to vector<8x512xf32>
    %cst = arith.constant dense<0.000000e+00> : vector<2x512xf32>
    %3 = tpu.matmul %0, %2, %cst {dimension_numbers = #tpu.dot_dimension_numbers<[1], [0], [0], [1], [0, 0, 1, 1], [], []>} : vector<2x8xf32>, vector<8x512xf32>, vector<2x512xf32> -> vector<2x512xf32>
    %c0_4 = arith.constant 0 : index
    %c0_5 = arith.constant 0 : index
    %4 = vector.load %arg4[%c0_4, %c0_5] : memref<2x1xf32, #tpu.memory_space<vmem>>, vector<2x1xf32>
    %5 = vector.broadcast %4 : vector<2x1xf32> to vector<2x512xf32>
    %6 = arith.addf %3, %5 : vector<2x512xf32>
    %c0_6 = arith.constant 0 : index
    %c0_7 = arith.constant 0 : index
    %c0_8 = arith.constant 0 : index
    %7 = vector.load %arg5[%c0_6, %c0_7, %c0_8] : memref<1x2x512xf32, #tpu.memory_space<vmem>>, vector<1x2x512xf32>
    %8 = vector.shape_cast %7 : vector<1x2x512xf32> to vector<2x512xf32>
    %9 = vector.shape_cast %6 : vector<2x512xf32> to vector<1x2x512xf32>
    tpu.vector_store %arg5[%c0_6, %c0_7, %c0_8], %9 {strides = array<i32>} : memref<1x2x512xf32, #tpu.memory_space<vmem>>, vector<1x2x512xf32>,
    return
  }
  func.func @transform_0(%arg0: i32, %arg1: i32) -> (i32, i32, i32) {
    %c0_i32 = arith.constant 0 : i32
    %c0_i32_0 = arith.constant 0 : i32
    return %arg0, %c0_i32, %arg1 : i32, i32, i32
  }
  func.func @transform_1(%arg0: i32, %arg1: i32) -> (i32, i32) {
    %c0_i32 = arith.constant 0 : i32
    %c0_i32_0 = arith.constant 0 : i32
    %c0_i32_1 = arith.constant 0 : i32
    return %c0_i32, %c0_i32_0 : i32, i32
  }
  func.func @transform_2(%arg0: i32, %arg1: i32) -> (i32, i32) {
    %c0_i32 = arith.constant 0 : i32
    %c0_i32_0 = arith.constant 0 : i32
    %c0_i32_1 = arith.constant 0 : i32
    return %c0_i32, %c0_i32_0 : i32, i32
  }
  func.func @transform_3(%arg0: i32, %arg1: i32) -> (i32, i32, i32) {
    %c0_i32 = arith.constant 0 : i32
    %c0_i32_0 = arith.constant 0 : i32
    return %arg0, %c0_i32, %arg1 : i32, i32, i32
  }
}

module attributes {stable_mosaic.version = 11 : i64} {
  func.func @_att_kernel(%arg0: i32, %arg1: i32, %arg2: memref<1x32x512xf32, #tpu.memory_space<vmem>>, %arg3: memref<2x32xf32, #tpu.memory_space<vmem>>, %arg4: memref<1x2x512xf32, #tpu.memory_space<vmem>>, %arg5: memref<2x1xf32, #tpu.memory_space<vmem>>, %arg6: memref<1xf32, #tpu.memory_space<smem>>, %arg7: memref<1x1x512xf32, #tpu.memory_space<vmem>>) attributes {dimension_semantics = [#tpu.dimension_semantics<parallel>, #tpu.dimension_semantics<parallel>], iteration_bounds = array<i64: 2, 1>, scalar_prefetch = 0 : i64, scratch_operands = 0 : i64, tpu.core_type = #tpu.core_type<tc>, window_params = [{transform_indices = @transform_0, window_bounds = array<i64: 1, 32, 512>}, {pipeline_mode = #tpu.pipeline_mode<synchronous>, transform_indices = @transform_1, window_bounds = array<i64: 2, 32>}, {transform_indices = @transform_2, window_bounds = array<i64: 1, 2, 512>}, {pipeline_mode = #tpu.pipeline_mode<synchronous>, transform_indices = @transform_3, window_bounds = array<i64: 2, 1>}, {transform_indices = @transform_4, window_bounds = array<i64: 1>}, {transform_indices = @transform_5, window_bounds = array<i64: 1, 1, 512>}]} {
    %c0 = arith.constant 0 : index
    %c0_0 = arith.constant 0 : index
    %0 = vector.load %arg3[%c0, %c0_0] : memref<2x32xf32, #tpu.memory_space<vmem>>, vector<2x32xf32>
    %c0_1 = arith.constant 0 : index
    %c0_2 = arith.constant 0 : index
    %c0_3 = arith.constant 0 : index
    %1 = vector.load %arg2[%c0_1, %c0_2, %c0_3] : memref<1x32x512xf32, #tpu.memory_space<vmem>>, vector<1x32x512xf32>
    %2 = vector.shape_cast %1 : vector<1x32x512xf32> to vector<32x512xf32>
    %cst = arith.constant dense<0.000000e+00> : vector<2x512xf32>
    %3 = tpu.matmul %0, %2, %cst {dimension_numbers = #tpu.dot_dimension_numbers<[1], [0], [0], [1], [0, 0, 1, 1], [], []>} : vector<2x32xf32>, vector<32x512xf32>, vector<2x512xf32> -> vector<2x512xf32>
    %c0_4 = arith.constant 0 : index
    %c0_5 = arith.constant 0 : index
    %c0_6 = arith.constant 0 : index
    %4 = vector.load %arg4[%c0_4, %c0_5, %c0_6] : memref<1x2x512xf32, #tpu.memory_space<vmem>>, vector<1x2x512xf32>
    %5 = vector.shape_cast %4 : vector<1x2x512xf32> to vector<2x512xf32>
    %6 = arith.addf %3, %5 : vector<2x512xf32>
    %cst_7 = arith.constant 0.000000e+00 : f32
    %7 = vector.broadcast %cst_7 : f32 to vector<2x512xf32>
    %8 = arith.maximumf %6, %7 : vector<2x512xf32>
    %c0_8 = arith.constant 0 : index
    %c0_9 = arith.constant 0 : index
    %9 = vector.load %arg5[%c0_8, %c0_9] : memref<2x1xf32, #tpu.memory_space<vmem>>, vector<2x1xf32>
    %10 = vector.broadcast %9 : vector<2x1xf32> to vector<2x512xf32>
    %11 = arith.mulf %8, %10 : vector<2x512xf32>
    %cst_10 = arith.constant dense<0.000000e+00> : vector<512xf32>
    %12 = vector.multi_reduction <add>, %11, %cst_10 [0] : vector<2x512xf32> to vector<512xf32>
    %13 = vector.shape_cast %12 : vector<512xf32> to vector<1x512xf32>
    %c0_11 = arith.constant 0 : index
    %14 = memref.load %arg6[%c0_11] : memref<1xf32, #tpu.memory_space<smem>>
    %15 = vector.broadcast %14 : f32 to vector<1x512xf32>
    %16 = arith.addf %13, %15 : vector<1x512xf32>
    %17 = arith.negf %16 : vector<1x512xf32>
    %18 = math.exp %17 : vector<1x512xf32>
    %cst_12 = arith.constant 1.000000e+00 : f32
    %19 = vector.broadcast %cst_12 : f32 to vector<1x512xf32>
    %20 = arith.addf %19, %18 : vector<1x512xf32>
    %21 = arith.divf %19, %20 : vector<1x512xf32>
    %c0_13 = arith.constant 0 : index
    %c0_14 = arith.constant 0 : index
    %c0_15 = arith.constant 0 : index
    %22 = vector.load %arg7[%c0_13, %c0_14, %c0_15] : memref<1x1x512xf32, #tpu.memory_space<vmem>>, vector<1x1x512xf32>
    %23 = vector.shape_cast %22 : vector<1x1x512xf32> to vector<1x512xf32>
    %24 = vector.shape_cast %21 : vector<1x512xf32> to vector<1x1x512xf32>
    tpu.vector_store %arg7[%c0_13, %c0_14, %c0_15], %24 {strides = array<i32>} : memref<1x1x512xf32, #tpu.memory_space<vmem>>, vector<1x1x512xf32>,
    return
  }
  func.func @transform_0(%arg0: i32, %arg1: i32) -> (i32, i32, i32) {
    %c0_i32 = arith.constant 0 : i32
    %c0_i32_0 = arith.constant 0 : i32
    return %arg0, %c0_i32, %arg1 : i32, i32, i32
  }
  func.func @transform_1(%arg0: i32, %arg1: i32) -> (i32, i32) {
    %c0_i32 = arith.constant 0 : i32
    %c0_i32_0 = arith.constant 0 : i32
    %c0_i32_1 = arith.constant 0 : i32
    return %c0_i32, %c0_i32_0 : i32, i32
  }
  func.func @transform_2(%arg0: i32, %arg1: i32) -> (i32, i32, i32) {
    %c0_i32 = arith.constant 0 : i32
    %c0_i32_0 = arith.constant 0 : i32
    return %arg0, %c0_i32, %arg1 : i32, i32, i32
  }
  func.func @transform_3(%arg0: i32, %arg1: i32) -> (i32, i32) {
    %c0_i32 = arith.constant 0 : i32
    %c0_i32_0 = arith.constant 0 : i32
    %c0_i32_1 = arith.constant 0 : i32
    return %c0_i32, %c0_i32_0 : i32, i32
  }
  func.func @transform_4(%arg0: i32, %arg1: i32) -> i32 {
    %c0_i32 = arith.constant 0 : i32
    %c0_i32_0 = arith.constant 0 : i32
    return %c0_i32 : i32
  }
  func.func @transform_5(%arg0: i32, %arg1: i32) -> (i32, i32, i32) {
    %c0_i32 = arith.constant 0 : i32
    %c0_i32_0 = arith.constant 0 : i32
    return %arg0, %c0_i32, %arg1 : i32, i32, i32
  }
}

module attributes {stable_mosaic.version = 11 : i64} {
  func.func @_wbn_fused_kernel(%arg0: i32, %arg1: i32, %arg2: memref<1x4x4096xf32, #tpu.memory_space<vmem>>, %arg3: memref<1x1x4096xf32, #tpu.memory_space<vmem>>, %arg4: memref<4x4xf32, #tpu.memory_space<vmem>>, %arg5: memref<4x1xf32, #tpu.memory_space<vmem>>, %arg6: memref<4x1xf32, #tpu.memory_space<vmem>>, %arg7: memref<2x4x4096xf32, #tpu.memory_space<vmem>>, %arg8: memref<4x1xf32, #tpu.memory_space<vmem>>) attributes {dimension_semantics = [#tpu.dimension_semantics<arbitrary>, #tpu.dimension_semantics<arbitrary>], iteration_bounds = array<i64: 2, 1>, scalar_prefetch = 0 : i64, scratch_operands = 1 : i64, tpu.core_type = #tpu.core_type<tc>, window_params = [{transform_indices = @transform_0, window_bounds = array<i64: 1, 4, 4096>}, {transform_indices = @transform_1, window_bounds = array<i64: 1, 1, 4096>}, {pipeline_mode = #tpu.pipeline_mode<synchronous>, transform_indices = @transform_2, window_bounds = array<i64: 4, 4>}, {pipeline_mode = #tpu.pipeline_mode<synchronous>, transform_indices = @transform_3, window_bounds = array<i64: 4, 1>}, {pipeline_mode = #tpu.pipeline_mode<synchronous>, transform_indices = @transform_4, window_bounds = array<i64: 4, 1>}, {pipeline_mode = #tpu.pipeline_mode<synchronous>, transform_indices = @transform_5, window_bounds = array<i64: 2, 4, 4096>}]} {
    %c0_i32 = arith.constant 0 : i32
    %0 = arith.cmpi eq, %arg0, %c0_i32 : i32
    %c0_i32_0 = arith.constant 0 : i32
    %1 = arith.cmpi eq, %arg1, %c0_i32_0 : i32
    %2 = arith.andi %0, %1 : i1
    %3 = arith.extui %2 : i1 to i32
    %c0_i32_1 = arith.constant 0 : i32
    %4 = arith.cmpi ne, %3, %c0_i32_1 : i32
    scf.if %4 {
      %cst_17 = arith.constant 0.000000e+00 : f32
      %30 = vector.broadcast %cst_17 : f32 to vector<4x1xf32>
      %c0_18 = arith.constant 0 : index
      %c0_19 = arith.constant 0 : index
      %31 = vector.load %arg8[%c0_18, %c0_19] : memref<4x1xf32, #tpu.memory_space<vmem>>, vector<4x1xf32>
      tpu.vector_store %arg8[%c0_18, %c0_19], %30 {strides = array<i32>} : memref<4x1xf32, #tpu.memory_space<vmem>>, vector<4x1xf32>,
    } else {
    }
    %c0 = arith.constant 0 : index
    %c0_2 = arith.constant 0 : index
    %c0_3 = arith.constant 0 : index
    %5 = vector.load %arg2[%c0, %c0_2, %c0_3] : memref<1x4x4096xf32, #tpu.memory_space<vmem>>, vector<1x4x4096xf32>
    %6 = vector.shape_cast %5 : vector<1x4x4096xf32> to vector<4x4096xf32>
    %c0_4 = arith.constant 0 : index
    %c0_5 = arith.constant 0 : index
    %c0_6 = arith.constant 0 : index
    %7 = vector.load %arg3[%c0_4, %c0_5, %c0_6] : memref<1x1x4096xf32, #tpu.memory_space<vmem>>, vector<1x1x4096xf32>
    %8 = vector.shape_cast %7 : vector<1x1x4096xf32> to vector<1x4096xf32>
    %9 = vector.broadcast %8 : vector<1x4096xf32> to vector<4x4096xf32>
    %10 = arith.mulf %6, %9 : vector<4x4096xf32>
    %c0_7 = arith.constant 0 : index
    %c0_8 = arith.constant 0 : index
    %11 = vector.load %arg4[%c0_7, %c0_8] : memref<4x4xf32, #tpu.memory_space<vmem>>, vector<4x4xf32>
    %cst = arith.constant dense<0.000000e+00> : vector<4x4096xf32>
    %12 = tpu.matmul %11, %10, %cst {dimension_numbers = #tpu.dot_dimension_numbers<[1], [0], [0], [1], [0, 0, 1, 1], [], []>} : vector<4x4xf32>, vector<4x4096xf32>, vector<4x4096xf32> -> vector<4x4096xf32>
    %c0_9 = arith.constant 0 : index
    %c0_10 = arith.constant 0 : index
    %13 = vector.load %arg8[%c0_9, %c0_10] : memref<4x1xf32, #tpu.memory_space<vmem>>, vector<4x1xf32>
    %cst_11 = arith.constant dense<0.000000e+00> : vector<4xf32>
    %14 = vector.multi_reduction <add>, %12, %cst_11 [1] : vector<4x4096xf32> to vector<4xf32>
    %15 = vector.shape_cast %14 : vector<4xf32> to vector<4x1xf32>
    %16 = arith.addf %13, %15 : vector<4x1xf32>
    %c0_12 = arith.constant 0 : index
    %c0_13 = arith.constant 0 : index
    %17 = vector.load %arg8[%c0_12, %c0_13] : memref<4x1xf32, #tpu.memory_space<vmem>>, vector<4x1xf32>
    tpu.vector_store %arg8[%c0_12, %c0_13], %16 {strides = array<i32>} : memref<4x1xf32, #tpu.memory_space<vmem>>, vector<4x1xf32>,
    %c4096_i32 = arith.constant 4096 : i32
    %18 = arith.muli %arg1, %c4096_i32 : i32
    %19 = tpu.assume_multiple %18, 128 : i32
    %20 = arith.index_cast %arg0 : i32 to index
    %c0_14 = arith.constant 0 : index
    %21 = arith.index_cast %19 : i32 to index
    %22 = vector.load %arg7[%20, %c0_14, %21] : memref<2x4x4096xf32, #tpu.memory_space<vmem>>, vector<1x4x4096xf32>
    %23 = vector.shape_cast %22 : vector<1x4x4096xf32> to vector<4x4096xf32>
    %24 = vector.shape_cast %12 : vector<4x4096xf32> to vector<1x4x4096xf32>
    tpu.vector_store %arg7[%20, %c0_14, %21], %24 {strides = array<i32>} : memref<2x4x4096xf32, #tpu.memory_space<vmem>>, vector<1x4x4096xf32>,
    %c1_i32 = arith.constant 1 : i32
    %25 = arith.cmpi eq, %arg0, %c1_i32 : i32
    %c0_i32_15 = arith.constant 0 : i32
    %26 = arith.cmpi eq, %arg1, %c0_i32_15 : i32
    %27 = arith.andi %25, %26 : i1
    %28 = arith.extui %27 : i1 to i32
    %c0_i32_16 = arith.constant 0 : i32
    %29 = arith.cmpi ne, %28, %c0_i32_16 : i32
    scf.if %29 {
      %c0_17 = arith.constant 0 : index
      %c0_18 = arith.constant 0 : index
      %30 = vector.load %arg8[%c0_17, %c0_18] : memref<4x1xf32, #tpu.memory_space<vmem>>, vector<4x1xf32>
      %cst_19 = arith.constant 1.22070313E-4 : f32
      %31 = vector.broadcast %cst_19 : f32 to vector<4x1xf32>
      %32 = arith.mulf %30, %31 : vector<4x1xf32>
      %33 = vector.shape_cast %32 : vector<4x1xf32> to vector<1x4x1xf32>
      %c0_20 = arith.constant 0 : index
      %c0_21 = arith.constant 0 : index
      %c0_22 = arith.constant 0 : index
      %34 = vector.load %arg7[%c0_20, %c0_21, %c0_22] : memref<2x4x4096xf32, #tpu.memory_space<vmem>>, vector<2x4x4096xf32>
      %35 = vector.broadcast %33 : vector<1x4x1xf32> to vector<2x4x4096xf32>
      %36 = arith.subf %34, %35 : vector<2x4x4096xf32>
      %37 = arith.mulf %36, %36 : vector<2x4x4096xf32>
      %cst_23 = arith.constant dense<0.000000e+00> : vector<2x4xf32>
      %38 = vector.multi_reduction <add>, %37, %cst_23 [2] : vector<2x4x4096xf32> to vector<2x4xf32>
      %39 = vector.shape_cast %38 : vector<2x4xf32> to vector<2x4x1xf32>
      %cst_24 = arith.constant dense<0.000000e+00> : vector<4x1xf32>
      %40 = vector.multi_reduction <add>, %39, %cst_24 [0] : vector<2x4x1xf32> to vector<4x1xf32>
      %41 = vector.shape_cast %40 : vector<4x1xf32> to vector<1x4x1xf32>
      %cst_25 = arith.constant 1.22070313E-4 : f32
      %42 = vector.broadcast %cst_25 : f32 to vector<1x4x1xf32>
      %43 = arith.mulf %41, %42 : vector<1x4x1xf32>
      %cst_26 = arith.constant 0.000000e+00 : f32
      %44 = vector.broadcast %cst_26 : f32 to vector<1x4x1xf32>
      %45 = arith.maximumf %43, %44 : vector<1x4x1xf32>
      %c0_27 = arith.constant 0 : index
      %c0_28 = arith.constant 0 : index
      %46 = vector.load %arg5[%c0_27, %c0_28] : memref<4x1xf32, #tpu.memory_space<vmem>>, vector<4x1xf32>
      %47 = vector.shape_cast %46 : vector<4x1xf32> to vector<1x4x1xf32>
      %cst_29 = arith.constant 9.99999974E-6 : f32
      %48 = vector.broadcast %cst_29 : f32 to vector<1x4x1xf32>
      %49 = arith.addf %45, %48 : vector<1x4x1xf32>
      %50 = math.rsqrt %49 : vector<1x4x1xf32>
      %51 = arith.mulf %47, %50 : vector<1x4x1xf32>
      %c0_30 = arith.constant 0 : index
      %c0_31 = arith.constant 0 : index
      %52 = vector.load %arg6[%c0_30, %c0_31] : memref<4x1xf32, #tpu.memory_space<vmem>>, vector<4x1xf32>
      %53 = vector.shape_cast %52 : vector<4x1xf32> to vector<1x4x1xf32>
      %54 = arith.mulf %33, %51 : vector<1x4x1xf32>
      %55 = arith.subf %53, %54 : vector<1x4x1xf32>
      %56 = vector.broadcast %51 : vector<1x4x1xf32> to vector<2x4x4096xf32>
      %57 = arith.mulf %34, %56 : vector<2x4x4096xf32>
      %58 = vector.broadcast %55 : vector<1x4x1xf32> to vector<2x4x4096xf32>
      %59 = arith.addf %57, %58 : vector<2x4x4096xf32>
      %c0_32 = arith.constant 0 : index
      %c0_33 = arith.constant 0 : index
      %c0_34 = arith.constant 0 : index
      %60 = vector.load %arg7[%c0_32, %c0_33, %c0_34] : memref<2x4x4096xf32, #tpu.memory_space<vmem>>, vector<2x4x4096xf32>
      tpu.vector_store %arg7[%c0_32, %c0_33, %c0_34], %59 {strides = array<i32>} : memref<2x4x4096xf32, #tpu.memory_space<vmem>>, vector<2x4x4096xf32>,
    } else {
    }
    return
  }
  func.func @transform_0(%arg0: i32, %arg1: i32) -> (i32, i32, i32) {
    %c0_i32 = arith.constant 0 : i32
    %c0_i32_0 = arith.constant 0 : i32
    return %arg0, %c0_i32, %arg1 : i32, i32, i32
  }
  func.func @transform_1(%arg0: i32, %arg1: i32) -> (i32, i32, i32) {
    %c0_i32 = arith.constant 0 : i32
    %c0_i32_0 = arith.constant 0 : i32
    return %arg0, %c0_i32, %arg1 : i32, i32, i32
  }
  func.func @transform_2(%arg0: i32, %arg1: i32) -> (i32, i32) {
    %c0_i32 = arith.constant 0 : i32
    %c0_i32_0 = arith.constant 0 : i32
    %c0_i32_1 = arith.constant 0 : i32
    return %c0_i32, %c0_i32_0 : i32, i32
  }
  func.func @transform_3(%arg0: i32, %arg1: i32) -> (i32, i32) {
    %c0_i32 = arith.constant 0 : i32
    %c0_i32_0 = arith.constant 0 : i32
    %c0_i32_1 = arith.constant 0 : i32
    return %c0_i32, %c0_i32_0 : i32, i32
  }
  func.func @transform_4(%arg0: i32, %arg1: i32) -> (i32, i32) {
    %c0_i32 = arith.constant 0 : i32
    %c0_i32_0 = arith.constant 0 : i32
    %c0_i32_1 = arith.constant 0 : i32
    return %c0_i32, %c0_i32_0 : i32, i32
  }
  func.func @transform_5(%arg0: i32, %arg1: i32) -> (i32, i32, i32) {
    %c0_i32 = arith.constant 0 : i32
    %c0_i32_0 = arith.constant 0 : i32
    %c0_i32_1 = arith.constant 0 : i32
    %c0_i32_2 = arith.constant 0 : i32
    return %c0_i32, %c0_i32_0, %c0_i32_1 : i32, i32, i32
  }
}

</mosaic_0001>

<bundles_post_ra>
// kernel: grid_attention_forward.3
= control target key start
LH: loop header
LB: loop body
LE: loop exit
PB: predicated region body
PF: predicated region fallthrough
CT: control target
= control target key end

     0   :  { %s495_s12 = smov 0   ;;  %s497_s13 = smov 0   ;;  %s538_s0 = inlined_call_operand.vmem [shape: f32[2,8,512], index: 0, kind: input, shape index: {}]   ;;  %s539_s1 = inlined_call_operand.vmem [shape: f32[2,8], index: 1, kind: input, shape index: {}]   ;;  %s540_s2 = inlined_call_operand.vmem [shape: f32[2,1], index: 2, kind: input, shape index: {}]   ;;  %s541_s3 = inlined_call_operand.vmem [shape: f32[2,2,512], index: 3, kind: output, shape index: {}]  }
   0x1   :  { %s499_s14 = smov 0  }
   0x2 LB: > { %s25_s15 = sadd.s32 1, %s468_s13  ;;  %p411_p0 = scmp.ge.s32.totalorder %s472_s14, 1  ;;  %s472_s14 = sphi %s499_s14, %s13_s14   ;;  %s468_s13 = sphi %s497_s13, %s543_s13   ;;  %s464_s12 = sphi %s495_s12, %s542_s12  }
   0x3   : > { %p27_p1 = scmp.ge.s32.totalorder %s25_s15, 2  ;;  %p158_p2 = scmp.lt.s32.totalorder %s472_s14, 3 }
   0x5   : > { %s545_s15 = smov (%p27_p1, %s25_s15), 0  ;;  %p159_p3 = pnand %p411_p0, %p158_p2 }
   0x6   : > { %p191_p4 = scmp.lt.s32.totalorder (!%p159_p3), %s464_s12, 1 }
   0x7   : > { %162 = sbr.rel (%p159_p3) target bundleno = 156 (0x9c), region = 32 }
   0xc   : > { %v474_v0 = vmov 0   ;;  %v215_v1 = vld [vmem:[%s540_s2] sm:$0x3]  ;;  %s547_s12 = smov (!%p191_p4, %s464_s12), 1  ;;  %vm221_vm0 = vcmask 64512   ;;  %vm312_vm1 = vcmask 1041408  }
   0xd   : > { %449 = vset.pattern.permute.xlu0 %v474_v0  ;;  %s422_s18 = sshll.u32 %s547_s12, 5  ;;  %v210_v2 = vld [vmem:[%s539_s1] sm:$0x3]  ;;  %s423_s24 = sshll.u32 %s547_s12, 3  ;;  %vm314_vm2 = vcmask 1045508   ;;  %vm316_vm3 = vcmask 1043456  }
   0xe   : > { %218 = vperm.xlu0 %449, %v215_v1   ;;  %s198_s21 = scalar_lea.vmem %s538_s0, %s422_s18  ;;  %s208_s27 = scalar_lea.vmem %s541_s3, %s423_s24 }
   0xf   : > { %v213_v3 = vld [vmem:[%s198_s21 + $0x10] sm:$0xff]  ;;  %v214_v4 = vld [vmem:[%s198_s21 + $0x18] sm:$0xff]  ;;  %v212_v5 = vld [vmem:[%s198_s21 + $0x8] sm:$0xff] }
  0x10   : > { %280 = vmatpush.msra.mxu2 %v213_v3  ;;  %300 = vmatpush.msra.mxu3 %v214_v4  ;;  %v211_v6 = vld [vmem:[%s198_s21] sm:$0xff] }
  0x11   : > { %418 = vmatmul.msk.f32.vlgmr.msra.gmra.mxu2 %vm221_vm0, %v210_v2  ;;  %419 = vmatmul.msk.f32.vlgmr.msra.gmra.mxu3 %vm221_vm0, %v210_v2 }
  0x12   : > { %260 = vmatpush.msra.mxu1 %v212_v5  ;;  %240 = vmatpush.msra.mxu0 %v211_v6 }
  0x13   : > { %417 = vmatmul.msk.f32.vlgmr.msra.gmra.mxu1 %vm221_vm0, %v210_v2  ;;  %416 = vmatmul.msk.f32.vlgmr.msra.gmra.mxu0 %vm221_vm0, %v210_v2 }
  0x80   : > { %v219_v7 = vpop.permute.xlu0 %218 }
  0x90   : > { %v262_v8 = vpop.f32.mrf.mxu1  ;;  %v242_v10 = vpop.f32.mrf.mxu0 }
  0x91   : > { %v263_v9 = vadd.f32 %v262_v8, %v219_v7  ;;  %v243_v14 = vadd.f32 %v242_v10, %v219_v7 }
  0x93   : > { %v309_v13 = vrot.slane %v263_v9, 6 }
  0x94   : > { %v282_v11 = vpop.f32.mrf.mxu2  ;;  %v302_v12 = vpop.f32.mrf.mxu3 }
  0x95   : > { %v283_v15 = vadd.f32 %v282_v11, %v219_v7  ;;  %v303_v16 = vadd.f32 %v302_v12, %v219_v7  ;;  %v313_v19 = vsel %vm312_vm1, %v243_v14, %v309_v13 }
  0x97   : > { %v310_v17 = vrot.slane %v283_v15, 4  ;;  %v311_v18 = vrot.slane %v303_v16, 2 }
  0x99   : > { %v315_v20 = vsel %vm314_vm2, %v310_v17, %v311_v18 }
  0x9a   : > { %v317_v21 = vsel %vm316_vm3, %v313_v19, %v315_v20 }
  0x9b   : > { %319 = vst [vmem:[%s208_s27] sm:$0xff] %v317_v21 }
  0x9c PF: > { %s13_s14 = sadd.s32 1, %s472_s14   ;;  %s542_s12 = smov %s468_s13 }
  0x9d   : > { %p10_p5 = scmp.ge.s32.totalorder %s13_s14, 4   ;;  %s543_s13 = smov %s545_s15 }
  0x9f   :  { %12 = sbr.rel (!%p10_p5) target bundleno = 2 (0x2), region = 62 }

// kernel: grid_attention_forward.4
= control target key start
LH: loop header
LB: loop body
LE: loop exit
PB: predicated region body
PF: predicated region fallthrough
CT: control target
= control target key end

     0   :  { %s775_s20 = smov 0   ;;  %s777_s21 = smov 0   ;;  %s861_s0 = inlined_call_operand.vmem [shape: f32[2,32,512], index: 0, kind: input, shape index: {}]   ;;  %s862_s1 = inlined_call_operand.vmem [shape: f32[2,32], index: 1, kind: input, shape index: {}]   ;;  %s863_s2 = inlined_call_operand.vmem [shape: f32[2,2,512], index: 2, kind: input, shape index: {}]   ;;  %s864_s3 = inlined_call_operand.vmem [shape: f32[2,1], index: 3, kind: input, shape index: {}]   ;;  %s865_s4 = inlined_call_operand.<no memory space> [shape: f32[1], index: 4, kind: input, shape index: {}]   ;;  %s866_s5 = inlined_call_operand.vmem [shape: f32[2,1,512], index: 5, kind: output, shape index: {}]  }
   0x1   :  { %10 = sst [smem:[#allocation2]] %s865_s4  ;;  %s779_s22 = smov 0  }
   0x2 LB: > { %s28_s4 = sadd.s32 1, %s735_s21  ;;  %p657_p0 = scmp.ge.s32.totalorder %s739_s22, 1  ;;  %s739_s22 = sphi %s779_s22, %s16_s22   ;;  %s735_s21 = sphi %s777_s21, %s874_s21   ;;  %s731_s20 = sphi %s775_s20, %s873_s20  }
   0x3   : > { %p30_p1 = scmp.ge.s32.totalorder %s28_s4, 2  ;;  %p226_p2 = scmp.lt.s32.totalorder %s739_s22, 3 }
   0x5   : > { %s876_s4 = smov (%p30_p1, %s28_s4), 0  ;;  %p227_p3 = pnand %p657_p0, %p226_p2 }
   0x6   : > { %p271_p4 = scmp.lt.s32.totalorder (!%p227_p3), %s731_s20, 1  ;;  %s454_s10 = sld [smem:[#allocation2]] (!%p227_p3) }
   0x7   : > { %230 = sbr.rel (%p227_p3) target bundleno = 212 (0xd4), region = 40 }
   0xc   : > { %v741_v0 = vmov 0   ;;  %v415_v1 = vld [vmem:[%s864_s3] sm:$0x3]  ;;  %s878_s20 = smov (!%p271_p4, %s731_s20), 1  ;;  %vm327_vm0 = vcmask 261120   ;;  %vm425_vm1 = vcmask 1041408   ;;  %v455_v57 = vstv %s454_s10 }
   0xd   : > { %700 = vset.pattern.permute.xlu0 %v741_v0  ;;  %s673_s25 = sshll.u32 %s878_s20, 7  ;;  %s674_s29 = sshll.u32 %s878_s20, 3  ;;  %v299_v19 = vld [vmem:[%s862_s1] sm:$0x3] }
   0xe   : > { %418 = vperm.xlu0 %700, %v415_v1   ;;  %s278_s28 = scalar_lea.vmem %s861_s0, %s673_s25  ;;  %s288_s7 = scalar_lea.vmem %s863_s2, %s674_s29 }
   0xf   : > { %v312_v2 = vld [vmem:[%s278_s28 + $0x60] sm:$0xff]  ;;  %v313_v3 = vld [vmem:[%s278_s28 + $0x68] sm:$0xff]  ;;  %v314_v4 = vld [vmem:[%s278_s28 + $0x70] sm:$0xff]  ;;  %s662_s11 = sshll.u32 %s878_s20, 2 }
  0x10   : > { %343 = vmatpush.msra.mxu0 %v312_v2  ;;  %363 = vmatpush.msra.mxu1 %v313_v3  ;;  %v315_v5 = vld [vmem:[%s278_s28 + $0x78] sm:$0xff]  ;;  %v308_v6 = vld [vmem:[%s278_s28 + $0x40] sm:$0xff]  ;;  %v309_v7 = vld [vmem:[%s278_s28 + $0x48] sm:$0xff]  ;;  %s297_s14 = scalar_lea.vmem %s866_s5, %s662_s11 }
  0x11   : > { %383 = vmatpush.msra.mxu2 %v314_v4  ;;  %403 = vmatpush.msra.mxu3 %v315_v5  ;;  %v310_v8 = vld [vmem:[%s278_s28 + $0x50] sm:$0xff]  ;;  %v311_v9 = vld [vmem:[%s278_s28 + $0x58] sm:$0xff]  ;;  %v304_v10 = vld [vmem:[%s278_s28 + $0x20] sm:$0xff] }
  0x12   : > { %344 = vmatpush.msra.mxu0 %v308_v6  ;;  %364 = vmatpush.msra.mxu1 %v309_v7  ;;  %v305_v11 = vld [vmem:[%s278_s28 + $0x28] sm:$0xff]  ;;  %v306_v12 = vld [vmem:[%s278_s28 + $0x30] sm:$0xff]  ;;  %v307_v13 = vld [vmem:[%s278_s28 + $0x38] sm:$0xff] }
  0x13   : > { %384 = vmatpush.msra.mxu2 %v310_v8  ;;  %404 = vmatpush.msra.mxu3 %v311_v9  ;;  %v300_v14 = vld [vmem:[%s278_s28] sm:$0xff]  ;;  %v301_v15 = vld [vmem:[%s278_s28 + $0x8] sm:$0xff]  ;;  %v302_v16 = vld [vmem:[%s278_s28 + $0x10] sm:$0xff] }
  0x14   : > { %345 = vmatpush.msra.mxu0 %v304_v10  ;;  %365 = vmatpush.msra.mxu1 %v305_v11  ;;  %v303_v17 = vld [vmem:[%s278_s28 + $0x18] sm:$0xff]  ;;  %v316_v18 = vld [vmem:[%s288_s7] sm:$0xff] }
  0x15   : > { %385 = vmatpush.msra.mxu2 %v306_v12  ;;  %405 = vmatpush.msra.mxu3 %v307_v13  ;;  %318 = vst [vmem:[#allocation1] ss:$4 sm:$0xff] %v316_v18 }
  0x16   : > { %346 = vmatpush.msra.mxu0 %v300_v14  ;;  %366 = vmatpush.msra.mxu1 %v301_v15 }
  0x17   : > { %386 = vmatpush.msra.mxu2 %v302_v16  ;;  %406 = vmatpush.msra.mxu3 %v303_v17 }
  0x18   : > { %663 = vmatmul.msk.f32.vlgmr.msra.gmra.mxu0 %vm327_vm0, %v299_v19  ;;  %664 = vmatmul.msk.f32.vlgmr.msra.gmra.mxu1 %vm327_vm0, %v299_v19 }
  0x19   : > { %665 = vmatmul.msk.f32.vlgmr.msra.gmra.mxu2 %vm327_vm0, %v299_v19  ;;  %666 = vmatmul.msk.f32.vlgmr.msra.gmra.mxu3 %vm327_vm0, %v299_v19 }
  0x1c   : > { %v319_v20 = vld.sshfl [vmem:[#allocation1] sm:$0xff pattern:$0x73625140]  ;;  %v320_v21 = vld.sshfl [vmem:[#allocation1 + $0x8] sm:$0xff pattern:$0x73625140] }
  0x1d   : > { %v321_v31 = vld.sshfl [vmem:[#allocation1 + $0x10] sm:$0xff pattern:$0x73625140]  ;;  %v322_v32 = vld.sshfl [vmem:[#allocation1 + $0x18] sm:$0xff pattern:$0x73625140] }
  0x80   : > { %v419_v26 = vpop.permute.xlu0 %418 }
  0x95   : > { %v348_v22 = vpop.f32.mrf.mxu0  ;;  %v368_v23 = vpop.f32.mrf.mxu1 }
  0x96   : > { %v349_v24 = vadd.f32 %v348_v22, %v319_v20  ;;  %v369_v25 = vadd.f32 %v368_v23, %v320_v21 }
  0x98   : > { %v411_v27 = vmax.f32 %v349_v24, 0.0  ;;  %v412_v28 = vmax.f32 %v369_v25, 0.0 }
  0x9a   : > { %v421_v29 = vmul.f32 %v419_v26, %v411_v27  ;;  %v422_v30 = vmul.f32 %v419_v26, %v412_v28 }
  0x9c   : > { %v426_v33 = vsel %vm425_vm1, %v421_v29, 0.0  ;;  %v433_v34 = vsel %vm425_vm1, %v422_v30, 0.0  ;;  %v388_v35 = vpop.f32.mrf.mxu2  ;;  %v408_v36 = vpop.f32.mrf.mxu3 }
  0x9d   : > { %v427_v37 = vrot.slane %v426_v33, 4  ;;  %v434_v38 = vrot.slane %v433_v34, 4  ;;  %v389_v39 = vadd.f32 %v388_v35, %v321_v31  ;;  %v409_v40 = vadd.f32 %v408_v36, %v322_v32 }
  0x9f   : > { %v428_v41 = vadd.f32 %v427_v37, %v426_v33  ;;  %v435_v42 = vadd.f32 %v434_v38, %v433_v34  ;;  %v413_v43 = vmax.f32 %v389_v39, 0.0  ;;  %v414_v44 = vmax.f32 %v409_v40, 0.0 }
  0xa1   : > { %v429_v45 = vrot.slane %v428_v41, 2  ;;  %v436_v46 = vrot.slane %v435_v42, 2  ;;  %v423_v47 = vmul.f32 %v419_v26, %v413_v43  ;;  %v424_v48 = vmul.f32 %v419_v26, %v414_v44 }
  0xa3   : > { %v430_v49 = vadd.f32 %v429_v45, %v428_v41  ;;  %v437_v50 = vadd.f32 %v436_v46, %v435_v42  ;;  %v440_v51 = vsel %vm425_vm1, %v423_v47, 0.0  ;;  %v447_v52 = vsel %vm425_vm1, %v424_v48, 0.0 }
  0xa4   : > { %v441_v53 = vrot.slane %v440_v51, 4  ;;  %v448_v54 = vrot.slane %v447_v52, 4 }
  0xa5   : > { %v431_v55 = vrot.slane %v430_v49, 1  ;;  %v438_v56 = vrot.slane %v437_v50, 1 }
  0xa6   : > { %v442_v58 = vadd.f32 %v441_v53, %v440_v51  ;;  %v449_v59 = vadd.f32 %v448_v54, %v447_v52 }
  0xa7   : > { %v432_v60 = vadd.f32 %v431_v55, %v430_v49  ;;  %v439_v61 = vadd.f32 %v438_v56, %v437_v50 }
  0xa8   : > { %v443_v62 = vrot.slane %v442_v58, 2  ;;  %v450_v63 = vrot.slane %v449_v59, 2 }
  0xa9   : > { %v456_v0 = vadd.f32 %v455_v57, %v432_v60  ;;  %v457_v1 = vadd.f32 %v455_v57, %v439_v61  ;;  %v549_v60 = vlaneseq }
  0xaa   : > { %v444_v2 = vadd.f32 %v443_v62, %v442_v58  ;;  %v451_v3 = vadd.f32 %v450_v63, %v449_v59 }
  0xab   : > { %v667_v4 = vmul.f32 -1.442695, %v456_v0  ;;  %v668_v5 = vmul.f32 -1.442695, %v457_v1 }
  0xac   : > { %v445_v6 = vrot.slane %v444_v2, 1  ;;  %v452_v7 = vrot.slane %v451_v3, 1 }
  0xad   : > { %701 = vpow2.f32 %v667_v4 }
  0xae   : > { %703 = vpow2.f32 %v668_v5  ;;  %v446_v8 = vadd.f32 %v445_v6, %v444_v2  ;;  %v453_v9 = vadd.f32 %v452_v7, %v451_v3 }
  0xb0   : > { %v458_v10 = vadd.f32 %v455_v57, %v446_v8  ;;  %v459_v11 = vadd.f32 %v455_v57, %v453_v9 }
  0xb2   : > { %v669_v12 = vmul.f32 -1.442695, %v458_v10  ;;  %v670_v13 = vmul.f32 -1.442695, %v459_v11 }
  0xb3   : > { %v702_v14 = vpop.eup %701 }
  0xb4   : > { %v704_v15 = vpop.eup %703  ;;  %v813_v16 = vadd.f32 1.0, %v702_v14  ;;  %705 = vpow2.f32 %v669_v12 }
  0xb5   : > { %v473_v17 = vadd.f32 1.0, %v704_v15  ;;  %707 = vpow2.f32 %v670_v13 }
  0xb6   : > { %709 = vrcp.f32 %v813_v16  ;;  %vm481_vm3 = vweird.f32 %v813_v16  ;;  %v485_v51 = vand.u32 2147483647, %v813_v16  ;;  %v487_v52 = vand.u32 2147483648, %v813_v16 }
  0xb7   : > { %711 = vrcp.f32 %v473_v17  ;;  %v500_v30 = vand.u32 2147483647, %v473_v17  ;;  %v502_v31 = vand.u32 2147483648, %v473_v17  ;;  %vm496_vm4 = vweird.f32 %v473_v17 }
  0xb8   : > { %v488_v1 = vor.u32 1.1754944e-38, %v487_v52 }
  0xb9   : > { %vm826_vm6 = vcmp.eq.f32.partialorder %v500_v30, 8.507059e+37  ;;  %v503_v40 = vor.u32 1.1754944e-38, %v502_v31 }
  0xba   : > { %v706_v18 = vpop.eup %705 }
  0xbb   : > { %v708_v19 = vpop.eup %707  ;;  %v474_v20 = vadd.f32 1.0, %v706_v18 }
  0xbc   : > { %v816_v21 = vpop.eup %709  ;;  %v475_v22 = vadd.f32 1.0, %v708_v19 }
  0xbd   : > { %v712_v23 = vpop.eup %711  ;;  %713 = vrcp.f32 %v474_v20  ;;  %v477_v24 = vmul.f32 %v816_v21, %v813_v16  ;;  %v515_v41 = vand.u32 2147483647, %v474_v20  ;;  %v517_v42 = vand.u32 2147483648, %v474_v20 }
  0xbe   : > { %v492_v25 = vmul.f32 %v712_v23, %v473_v17  ;;  %715 = vrcp.f32 %v475_v22  ;;  %vm497_vm2 = vweird.f32 %v712_v23  ;;  %vm482_vm8 = vweird.f32 %v816_v21 }
  0xbf   : > { %v478_v27 = vsub.f32 1.0, %v477_v24  ;;  %vm822_vm5 = vmor %vm496_vm4, %vm497_vm2  ;;  %vm511_vm9 = vweird.f32 %v474_v20  ;;  %v530_v46 = vand.u32 2147483647, %v475_v22  ;;  %v532_v47 = vand.u32 2147483648, %v475_v22 }
  0xc0   : > { %v493_v26 = vsub.f32 1.0, %v492_v25  ;;  %v518_v54 = vor.u32 1.1754944e-38, %v517_v42  ;;  %vm840_vm12 = vmor %vm481_vm3, %vm482_vm8  ;;  %vm516_vm13 = vcmp.eq.f32.partialorder %v515_v41, 8.507059e+37  ;;  %vm526_vm14 = vweird.f32 %v475_v22 }
  0xc1   : > { %v479_v35 = vmul.f32 %v816_v21, %v478_v27  ;;  %vm531_vm0 = vcmp.eq.f32.partialorder %v530_v46, 8.507059e+37  ;;  %v533_v59 = vor.u32 1.1754944e-38, %v532_v47  ;;  %vm543_vm2 = vcmask 1040384  }
  0xc2   : > { %v494_v28 = vmul.f32 %v712_v23, %v493_v26  ;;  %vm545_vm3 = vcmask 1042434   ;;  %vm486_vm4 = vcmp.eq.f32.partialorder %v485_v51, 8.507059e+37 }
  0xc3   : > { %v714_v29 = vpop.eup %713  ;;  %v480_v48 = vadd.f32 %v816_v21, %v479_v35 }
  0xc4   : > { %v495_v32 = vadd.f32 %v712_v23, %v494_v28  ;;  %v507_v33 = vmul.f32 %v714_v29, %v474_v20  ;;  %v716_v34 = vpop.eup %715  ;;  %vm512_vm7 = vweird.f32 %v714_v29 }
  0xc5   : > { %v522_v37 = vmul.f32 %v716_v34, %v475_v22  ;;  %vm527_vm10 = vweird.f32 %v716_v34  ;;  %vm513_vm11 = vmor %vm511_vm9, %vm512_vm7  ;;  %v484_v61 = vsel %vm840_vm12, %v816_v21, %v480_v48 }
  0xc6   : > { %v508_v36 = vsub.f32 1.0, %v507_v33  ;;  %v499_v43 = vsel %vm822_vm5, %v712_v23, %v495_v32  ;;  %vm528_vm15 = vmor %vm526_vm14, %vm527_vm10  ;;  %v489_v4 = vsel %vm486_vm4, %v488_v1, %v484_v61  ;;  %vm551_vm5 = vcmp.lt.s32.totalorder %v549_v60, 512 }
  0xc7   : > { %v523_v45 = vsub.f32 1.0, %v522_v37  ;;  %v504_v53 = vsel %vm826_vm6, %v503_v40, %v499_v43 }
  0xc8   : > { %v509_v44 = vmul.f32 %v714_v29, %v508_v36  ;;  %v540_v62 = vrot.slane %v504_v53, 7 }
  0xc9   : > { %v524_v50 = vmul.f32 %v716_v34, %v523_v45 }
  0xca   : > { %v510_v49 = vadd.f32 %v714_v29, %v509_v44  ;;  %v544_v5 = vsel %vm543_vm2, %v489_v4, %v540_v62 }
  0xcb   : > { %v525_v57 = vadd.f32 %v716_v34, %v524_v50 }
  0xcc   : > { %v514_v56 = vsel %vm513_vm11, %v714_v29, %v510_v49 }
  0xcd   : > { %v519_v58 = vsel %vm516_vm13, %v518_v54, %v514_v56  ;;  %v529_v0 = vsel %vm528_vm15, %v716_v34, %v525_v57 }
  0xce   : > { %v541_v63 = vrot.slane %v519_v58, 6  ;;  %v534_v2 = vsel %vm531_vm0, %v533_v59, %v529_v0 }
  0xcf   : > { %v542_v3 = vrot.slane %v534_v2, 5 }
  0xd1   : > { %v546_v6 = vsel %vm545_vm3, %v541_v63, %v542_v3 }
  0xd2   : > { %v547_v7 = vsel %vm425_vm1, %v544_v5, %v546_v6 }
  0xd3   : > { %553 = vst.msk [vmem:[%s297_s14] sm:$0xf] %vm551_vm5, %v547_v7 }
  0xd4 PF: > { %s16_s22 = sadd.s32 1, %s739_s22   ;;  %s873_s20 = smov %s735_s21 }
  0xd5   : > { %p13_p5 = scmp.ge.s32.totalorder %s16_s22, 4   ;;  %s874_s21 = smov %s876_s4 }
  0xd7   :  { %15 = sbr.rel (!%p13_p5) target bundleno = 2 (0x2), region = 73 }

// kernel: grid_attention_forward.5
= control target key start
LH: loop header
LB: loop body
LE: loop exit
PB: predicated region body
PF: predicated region fallthrough
CT: control target
= control target key end

     0   :  { %s2151_s18 = smov 0   ;;  %s2153_s19 = smov 0   ;;  %s2953_s0 = inlined_call_operand.vmem [shape: f32[2,4,4096], index: 0, kind: input, shape index: {}]   ;;  %s2954_s1 = inlined_call_operand.vmem [shape: f32[2,1,4096], index: 1, kind: input, shape index: {}]   ;;  %s2955_s2 = inlined_call_operand.vmem [shape: f32[4,4], index: 2, kind: input, shape index: {}]   ;;  %s2956_s3 = inlined_call_operand.vmem [shape: f32[4,1], index: 3, kind: input, shape index: {}]   ;;  %s2957_s4 = inlined_call_operand.vmem [shape: f32[4,1], index: 4, kind: input, shape index: {}]   ;;  %s2958_s5 = inlined_call_operand.vmem [shape: f32[2,4,4096], index: 5, kind: output, shape index: {}]  }
   0x1   :  { %s2155_s20 = smov 0  }
   0x2 LB: > { %s27_s21 = sadd.s32 1, %s2112_s19  ;;  %p1984_p0 = scmp.ge.s32.totalorder %s2116_s20, 1  ;;  %s2116_s20 = sphi %s2155_s20, %s15_s20   ;;  %s2112_s19 = sphi %s2153_s19, %s2960_s19   ;;  %s2108_s18 = sphi %s2151_s18, %s2959_s18  }
   0x3   : > { %p29_p1 = scmp.ge.s32.totalorder %s27_s21, 2  ;;  %p217_p2 = scmp.lt.s32.totalorder %s2116_s20, 3 }
   0x5   : > { %s2962_s21 = smov (%p29_p1, %s27_s21), 0  ;;  %p218_p3 = pnand %p1984_p0, %p217_p2 }
   0x6   : > { %p253_p4 = scmp.lt.s32.totalorder (!%p218_p3), %s2108_s18, 1  ;;  %p271_p5 = scmp.eq.s32.totalorder (!%p218_p3), %s2108_s18, 0 }
   0x7   : > { %221 = sbr.rel (%p218_p3) target bundleno = 895 (0x37f), region = 40 }
   0xc   : > { %s254_s22 = scalar_select %p253_p4, %s2108_s18, 1  ;;  %vm277_vm0 = vcmask (%p271_p5), 3072   ;;  %v2118_v0 = vmov (%p271_p5), 0.0  }
   0xd   : > { %276 = sbr.rel (!%p271_p5) target bundleno = 18 (0x12), region = 44  ;;  %278 = vst.msk [vmem:[#allocation2] sm:$0xf] (%p271_p5), %vm277_vm0, %v2118_v0 }
   0xe   : > { %s2058_s23 = sshll.u32 %s254_s22, 7  ;;  %s1987_s24 = sshll.u32 %s254_s22, 5 }
   0xf   : > { %s2177_s27 = scalar_lea.vmem %s2953_s0, %s2058_s23  ;;  %s2182_s30 = scalar_lea.vmem %s2954_s1, %s1987_s24 }
  0x12 PF: > { %v295_v1 = vld [vmem:[%s2182_s30] sm:$0xff]  ;;  %v296_v6 = vld [vmem:[%s2182_s30 + $0x8] sm:$0xff]  ;;  %vm351_vm1 = vcmask 1043456   ;;  %v282_v21 = vld [vmem:[%s2177_s27 + $0x18] sm:$0xff]  ;;  %vm468_vm2 = vcmask 31744   ;;  %s2060_s8 = sshll.u32 %s2108_s18, 7 }
  0x13   : > { %v303_v2 = vperm.slane %v295_v1, 0  ;;  %v304_v3 = vperm.slane %v295_v1, 1  ;;  %v305_v4 = vperm.slane %v295_v1, 2  ;;  %v306_v5 = vperm.slane %v295_v1, 3  ;;  %v279_v9 = vld [vmem:[%s2177_s27] sm:$0xff]  ;;  %v280_v11 = vld [vmem:[%s2177_s27 + $0x8] sm:$0xff]  ;;  %s2345_s11 = scalar_lea.vmem %s2958_s5, %s2060_s8 }
  0x14   : > { %v313_v7 = vperm.slane %v296_v6, 2  ;;  %v314_v8 = vperm.slane %v296_v6, 3  ;;  %v309_v13 = vperm.slane %v295_v1, 6  ;;  %v310_v14 = vperm.slane %v295_v1, 7  ;;  %v281_v28 = vld [vmem:[%s2177_s27 + $0x10] sm:$0xff]  ;;  %v284_v36 = vld [vmem:[%s2177_s27 + $0x28] sm:$0xff] }
  0x15   : > { %v335_v10 = vrot.slane %v304_v3, 4  ;;  %v336_v12 = vrot.slane %v306_v5, 4  ;;  %v311_v16 = vperm.slane %v296_v6, 0  ;;  %v312_v17 = vperm.slane %v296_v6, 1  ;;  %v2194_v31 = vld [vmem:[%s2182_s30 + $0x10] sm:$0xff]  ;;  %v283_v37 = vld [vmem:[%s2177_s27 + $0x20] sm:$0xff] }
  0x16   : > { %v340_v15 = vrot.slane %v314_v8, 4  ;;  %v308_v18 = vperm.slane %v295_v1, 5  ;;  %v338_v22 = vrot.slane %v310_v14, 4  ;;  %v307_v23 = vperm.slane %v295_v1, 4  ;;  %v286_v49 = vld [vmem:[%s2177_s27 + $0x38] sm:$0xff]  ;;  %v285_v57 = vld [vmem:[%s2177_s27 + $0x30] sm:$0xff] }
  0x17   : > { %v352_v19 = vsel %vm351_vm1, %v303_v2, %v335_v10  ;;  %v353_v20 = vsel %vm351_vm1, %v305_v4, %v336_v12  ;;  %v339_v26 = vrot.slane %v312_v17, 4  ;;  %v318_v30 = vperm.slane %v296_v6, 7  ;;  %v2210_v52 = vld [vmem:[%s2955_s2] sm:$0xf]  ;;  %v2219_v62 = vld [vmem:[%s2182_s30 + $0x18] sm:$0xff]  ;;  %v288_v4 = vld [vmem:[%s2177_s27 + $0x48] sm:$0xff] }
  0x18   : > { %v384_v24 = vmul.f32 %v352_v19, %v279_v9  ;;  %v385_v25 = vmul.f32 %v353_v20, %v280_v11  ;;  %v355_v27 = vsel %vm351_vm1, %v309_v13, %v338_v22  ;;  %v337_v29 = vrot.slane %v308_v18, 4  ;;  %v290_v17 = vld [vmem:[%s2177_s27 + $0x58] sm:$0xff]  ;;  %p1348_p6 = scmp.eq.s32.totalorder %s2108_s18, 1 }
  0x19   : > { %v357_v32 = vsel %vm351_vm1, %v313_v7, %v340_v15  ;;  %v387_v33 = vmul.f32 %v355_v27, %v282_v21  ;;  %v317_v34 = vperm.slane %v296_v6, 6  ;;  %v316_v35 = vperm.slane %v296_v6, 5  ;;  %v287_v7 = vld [vmem:[%s2177_s27 + $0x40] sm:$0xff] }
  0x1a   : > { %417 = vst [vmem:[#allocation1] ss:$2 sm:$0xff] %v384_v24  ;;  %v356_v38 = vsel %vm351_vm1, %v311_v16, %v339_v26  ;;  %v354_v39 = vsel %vm351_vm1, %v307_v23, %v337_v29  ;;  %v342_v40 = vrot.slane %v318_v30, 4  ;;  %v315_v41 = vperm.slane %v296_v6, 4  ;;  %v289_v24 = vld [vmem:[%s2177_s27 + $0x50] sm:$0xff] }
  0x1b   : > { %419 = vst [vmem:[#allocation1 + $0x10] ss:$2 sm:$0xff] %v385_v25  ;;  %v386_v42 = vmul.f32 %v354_v39, %v281_v28  ;;  %v341_v43 = vrot.slane %v316_v35, 4  ;;  %v322_v44 = vperm.slane %v2194_v31, 3  ;;  %v320_v45 = vperm.slane %v2194_v31, 1  ;;  %v291_v39 = vld [vmem:[%s2177_s27 + $0x60] sm:$0xff] }
  0x1c   : > { %423 = vst [vmem:[#allocation1 + $0x30] ss:$2 sm:$0xff] %v387_v33  ;;  %v326_v46 = vperm.slane %v2194_v31, 7  ;;  %v389_v47 = vmul.f32 %v357_v32, %v284_v36  ;;  %v388_v48 = vmul.f32 %v356_v38, %v283_v37  ;;  %v359_v50 = vsel %vm351_vm1, %v317_v34, %v342_v40  ;;  %v292_v32 = vld [vmem:[%s2177_s27 + $0x68] sm:$0xff] }
  0x1d   : > { %421 = vst [vmem:[#allocation1 + $0x20] ss:$2 sm:$0xff] %v386_v42  ;;  %v321_v51 = vperm.slane %v2194_v31, 2  ;;  %v358_v53 = vsel %vm351_vm1, %v315_v41, %v341_v43  ;;  %v344_v54 = vrot.slane %v322_v44, 4  ;;  %v319_v55 = vperm.slane %v2194_v31, 0 }
  0x1e   : > { %v325_v56 = vperm.slane %v2194_v31, 6  ;;  %v343_v58 = vrot.slane %v320_v45, 4  ;;  %v346_v59 = vrot.slane %v326_v46, 4  ;;  %v323_v60 = vperm.slane %v2194_v31, 4 }
  0x1f   : > { %v324_v61 = vperm.slane %v2194_v31, 5  ;;  %v391_v1 = vmul.f32 %v359_v50, %v286_v49  ;;  %v390_v6 = vmul.f32 %v358_v53, %v285_v57  ;;  %v330_v8 = vperm.slane %v2219_v62, 3  ;;  %v293_v50 = vld [vmem:[%s2177_s27 + $0x70] sm:$0xff] }
  0x20   : > { %v361_v10 = vsel %vm351_vm1, %v321_v51, %v344_v54  ;;  %v360_v13 = vsel %vm351_vm1, %v319_v55, %v343_v58  ;;  %v328_v14 = vperm.slane %v2219_v62, 1  ;;  %v363_v18 = vsel %vm351_vm1, %v325_v56, %v346_v59 }
  0x21   : > { %v425_v63 = vld.sshfl [vmem:[#allocation1 + $0x8] sm:$0xff pattern:$0x75316420]  ;;  %v424_v0 = vld.sshfl [vmem:[#allocation1] sm:$0xff pattern:$0x75316420]  ;;  %v393_v16 = vmul.f32 %v361_v10, %v288_v4  ;;  %v392_v20 = vmul.f32 %v360_v13, %v287_v7  ;;  %v395_v31 = vmul.f32 %v363_v18, %v290_v17 }
  0x22   : > { %1991 = vmatpush.msk.msra.mxu1 %vm351_vm1, %v425_v63  ;;  %v426_v2 = vld.sshfl [vmem:[#allocation1 + $0x10] sm:$0xff pattern:$0x75316420]  ;;  %v427_v3 = vld.sshfl [vmem:[#allocation1 + $0x18] sm:$0xff pattern:$0x75316420]  ;;  %1989 = vmatpush.msk.msra.mxu0 %vm351_vm1, %v424_v0 }
  0x23   : > { %1993 = vmatpush.msk.msra.mxu2 %vm351_vm1, %v426_v2  ;;  %433 = vst [vmem:[#allocation1 + $0x10] ss:$2 sm:$0xff] %v389_v47  ;;  %1995 = vmatpush.msk.msra.mxu3 %vm351_vm1, %v427_v3  ;;  %v430_v5 = vld.sshfl [vmem:[#allocation1 + $0x30] sm:$0xff pattern:$0x75316420]  ;;  %v345_v11 = vrot.slane %v324_v61, 4 }
  0x24   : > { %1992 = vmatmul.msk.f32.vlgmr.msra.gmra.mxu1 %vm468_vm2, %v2210_v52  ;;  %1994 = vmatmul.msk.f32.vlgmr.msra.gmra.mxu2 %vm468_vm2, %v2210_v52  ;;  %432 = vst [vmem:[#allocation1] ss:$2 sm:$0xff] %v388_v48  ;;  %v431_v9 = vld.sshfl [vmem:[#allocation1 + $0x38] sm:$0xff pattern:$0x75316420]  ;;  %v334_v19 = vperm.slane %v2219_v62, 7 }
  0x25   : > { %1996 = vmatmul.msk.f32.vlgmr.msra.gmra.mxu3 %vm468_vm2, %v2210_v52  ;;  %2001 = vmatpush.msk.msrb.mxu2 %vm351_vm1, %v430_v5  ;;  %v428_v12 = vld.sshfl [vmem:[#allocation1 + $0x20] sm:$0xff pattern:$0x75316420]  ;;  %435 = vst [vmem:[#allocation1 + $0x30] ss:$2 sm:$0xff] %v391_v1  ;;  %v329_v21 = vperm.slane %v2219_v62, 2  ;;  %v362_v25 = vsel %vm351_vm1, %v323_v60, %v345_v11 }
  0x26   : > { %1990 = vmatmul.msk.f32.vlgmr.msra.gmra.mxu0 %vm468_vm2, %v2210_v52  ;;  %2003 = vmatpush.msk.msrb.mxu3 %vm351_vm1, %v431_v9  ;;  %v429_v15 = vld.sshfl [vmem:[#allocation1 + $0x28] sm:$0xff pattern:$0x75316420]  ;;  %v348_v22 = vrot.slane %v330_v8, 4  ;;  %v327_v23 = vperm.slane %v2219_v62, 0  ;;  %v347_v26 = vrot.slane %v328_v14, 4  ;;  %v394_v37 = vmul.f32 %v362_v25, %v289_v24 }
  0x27   : > { %1997 = vmatpush.msk.msrb.mxu0 %vm351_vm1, %v428_v12  ;;  %434 = vst [vmem:[#allocation1 + $0x20] ss:$2 sm:$0xff] %v390_v6  ;;  %1999 = vmatpush.msk.msrb.mxu1 %vm351_vm1, %v429_v15  ;;  %v333_v27 = vperm.slane %v2219_v62, 6  ;;  %v332_v28 = vperm.slane %v2219_v62, 5  ;;  %v350_v34 = vrot.slane %v334_v19, 4  ;;  %v331_v41 = vperm.slane %v2219_v62, 4 }
  0x28   : > { %v365_v38 = vsel %vm351_vm1, %v329_v21, %v348_v22  ;;  %v364_v43 = vsel %vm351_vm1, %v327_v23, %v347_v26  ;;  %v294_v47 = vld [vmem:[%s2177_s27 + $0x78] sm:$0xff]  ;;  %vm1243_vm3 = vcmask 3072  }
  0x29   : > { %v349_v44 = vrot.slane %v332_v28, 4  ;;  %v397_v46 = vmul.f32 %v365_v38, %v292_v32  ;;  %v367_v48 = vsel %vm351_vm1, %v333_v27, %v350_v34  ;;  %v396_v49 = vmul.f32 %v364_v43, %v291_v39 }
  0x2a   : > { %v438_v29 = vld.sshfl [vmem:[#allocation1 + $0x10] sm:$0xff pattern:$0x75316420]  ;;  %v439_v30 = vld.sshfl [vmem:[#allocation1 + $0x18] sm:$0xff pattern:$0x75316420]  ;;  %v399_v55 = vmul.f32 %v367_v48, %v294_v47 }
  0x2b   : > { %2009 = vmatpush.msk.msra.mxu2 %vm351_vm1, %v438_v29  ;;  %v436_v33 = vld.sshfl [vmem:[#allocation1] sm:$0xff pattern:$0x75316420]  ;;  %445 = vst [vmem:[#allocation1 + $0x10] ss:$2 sm:$0xff] %v393_v16  ;;  %2011 = vmatpush.msk.msra.mxu3 %vm351_vm1, %v439_v30  ;;  %v366_v54 = vsel %vm351_vm1, %v331_v41, %v349_v44 }
  0x2c   : > { %2000 = vmatmul.msk.f32.vlgmr.msrb.gmra.mxu1 %vm468_vm2, %v2210_v52  ;;  %2002 = vmatmul.msk.f32.vlgmr.msrb.gmra.mxu2 %vm468_vm2, %v2210_v52  ;;  %v437_v35 = vld.sshfl [vmem:[#allocation1 + $0x8] sm:$0xff pattern:$0x75316420]  ;;  %v442_v36 = vld.sshfl [vmem:[#allocation1 + $0x30] sm:$0xff pattern:$0x75316420]  ;;  %v398_v58 = vmul.f32 %v366_v54, %v293_v50 }
  0x2d   : > { %2004 = vmatmul.msk.f32.vlgmr.msrb.gmra.mxu3 %vm468_vm2, %v2210_v52  ;;  %2005 = vmatpush.msk.msra.mxu0 %vm351_vm1, %v436_v33  ;;  %444 = vst [vmem:[#allocation1] ss:$2 sm:$0xff] %v392_v20  ;;  %v443_v40 = vld.sshfl [vmem:[#allocation1 + $0x38] sm:$0xff pattern:$0x75316420] }
  0x2e   : > { %1998 = vmatmul.msk.f32.vlgmr.msrb.gmra.mxu0 %vm468_vm2, %v2210_v52  ;;  %2007 = vmatpush.msk.msra.mxu1 %vm351_vm1, %v437_v35  ;;  %v440_v42 = vld.sshfl [vmem:[#allocation1 + $0x20] sm:$0xff pattern:$0x75316420]  ;;  %447 = vst [vmem:[#allocation1 + $0x30] ss:$2 sm:$0xff] %v395_v31 }
  0x2f   : > { %2017 = vmatpush.msk.msrb.mxu2 %vm351_vm1, %v442_v36  ;;  %2013 = vmatpush.msk.msrb.mxu0 %vm351_vm1, %v440_v42  ;;  %v441_v45 = vld.sshfl [vmem:[#allocation1 + $0x28] sm:$0xff pattern:$0x75316420] }
  0x30   : > { %2019 = vmatpush.msk.msrb.mxu3 %vm351_vm1, %v443_v40  ;;  %446 = vst [vmem:[#allocation1 + $0x20] ss:$2 sm:$0xff] %v394_v37  ;;  %2015 = vmatpush.msk.msrb.mxu1 %vm351_vm1, %v441_v45 }
  0x32   : > { %v450_v51 = vld.sshfl [vmem:[#allocation1 + $0x10] sm:$0xff pattern:$0x75316420]  ;;  %v451_v53 = vld.sshfl [vmem:[#allocation1 + $0x18] sm:$0xff pattern:$0x75316420] }
  0x33   : > { %457 = vst [vmem:[#allocation1 + $0x10] ss:$2 sm:$0xff] %v397_v46 }
  0x34   : > { %2008 = vmatmul.msk.f32.vlgmr.msra.gmra.mxu1 %vm468_vm2, %v2210_v52  ;;  %2010 = vmatmul.msk.f32.vlgmr.msra.gmra.mxu2 %vm468_vm2, %v2210_v52  ;;  %v448_v56 = vld.sshfl [vmem:[#allocation1] sm:$0xff pattern:$0x75316420]  ;;  %v449_v57 = vld.sshfl [vmem:[#allocation1 + $0x8] sm:$0xff pattern:$0x75316420] }
  0x35   : > { %2012 = vmatmul.msk.f32.vlgmr.msra.gmra.mxu3 %vm468_vm2, %v2210_v52  ;;  %2025 = vmatpush.msk.msra.mxu2 %vm351_vm1, %v450_v51  ;;  %456 = vst [vmem:[#allocation1] ss:$2 sm:$0xff] %v396_v49  ;;  %v454_v59 = vld.sshfl [vmem:[#allocation1 + $0x30] sm:$0xff pattern:$0x75316420] }
  0x36   : > { %2006 = vmatmul.msk.f32.vlgmr.msra.gmra.mxu0 %vm468_vm2, %v2210_v52  ;;  %2027 = vmatpush.msk.msra.mxu3 %vm351_vm1, %v451_v53  ;;  %v455_v60 = vld.sshfl [vmem:[#allocation1 + $0x38] sm:$0xff pattern:$0x75316420] }
  0x37   : > { %2021 = vmatpush.msk.msra.mxu0 %vm351_vm1, %v448_v56  ;;  %2023 = vmatpush.msk.msra.mxu1 %vm351_vm1, %v449_v57  ;;  %459 = vst [vmem:[#allocation1 + $0x30] ss:$2 sm:$0xff] %v399_v55  ;;  %v452_v61 = vld.sshfl [vmem:[#allocation1 + $0x20] sm:$0xff pattern:$0x75316420] }
  0x38   : > { %v453_v62 = vld.sshfl [vmem:[#allocation1 + $0x28] sm:$0xff pattern:$0x75316420] }
  0x39   : > { %458 = vst [vmem:[#allocation1 + $0x20] ss:$2 sm:$0xff] %v398_v58 }
  0x3a   : > { %v462_v63 = vld.sshfl [vmem:[#allocation1 + $0x10] sm:$0xff pattern:$0x75316420]  ;;  %v463_v0 = vld.sshfl [vmem:[#allocation1 + $0x18] sm:$0xff pattern:$0x75316420] }
  0x3c   : > { %2016 = vmatmul.msk.f32.vlgmr.msrb.gmra.mxu1 %vm468_vm2, %v2210_v52  ;;  %2018 = vmatmul.msk.f32.vlgmr.msrb.gmra.mxu2 %vm468_vm2, %v2210_v52  ;;  %v460_v1 = vld.sshfl [vmem:[#allocation1] sm:$0xff pattern:$0x75316420]  ;;  %v461_v2 = vld.sshfl [vmem:[#allocation1 + $0x8] sm:$0xff pattern:$0x75316420] }
  0x3d   : > { %2020 = vmatmul.msk.f32.vlgmr.msrb.gmra.mxu3 %vm468_vm2, %v2210_v52  ;;  %2033 = vmatpush.msk.msrb.mxu2 %vm351_vm1, %v454_v59 }
  0x3e   : > { %2014 = vmatmul.msk.f32.vlgmr.msrb.gmra.mxu0 %vm468_vm2, %v2210_v52  ;;  %2035 = vmatpush.msk.msrb.mxu3 %vm351_vm1, %v455_v60  ;;  %v466_v3 = vld.sshfl [vmem:[#allocation1 + $0x30] sm:$0xff pattern:$0x75316420]  ;;  %v467_v4 = vld.sshfl [vmem:[#allocation1 + $0x38] sm:$0xff pattern:$0x75316420] }
  0x3f   : > { %2029 = vmatpush.msk.msrb.mxu0 %vm351_vm1, %v452_v61  ;;  %2031 = vmatpush.msk.msrb.mxu1 %vm351_vm1, %v453_v62 }
  0x40   : > { %v464_v5 = vld.sshfl [vmem:[#allocation1 + $0x20] sm:$0xff pattern:$0x75316420]  ;;  %v465_v6 = vld.sshfl [vmem:[#allocation1 + $0x28] sm:$0xff pattern:$0x75316420] }
  0x44   : > { %2024 = vmatmul.msk.f32.vlgmr.msra.gmra.mxu1 %vm468_vm2, %v2210_v52  ;;  %2026 = vmatmul.msk.f32.vlgmr.msra.gmra.mxu2 %vm468_vm2, %v2210_v52 }
  0x45   : > { %2028 = vmatmul.msk.f32.vlgmr.msra.gmra.mxu3 %vm468_vm2, %v2210_v52  ;;  %2041 = vmatpush.msk.msra.mxu2 %vm351_vm1, %v462_v63 }
  0x46   : > { %2022 = vmatmul.msk.f32.vlgmr.msra.gmra.mxu0 %vm468_vm2, %v2210_v52  ;;  %2043 = vmatpush.msk.msra.mxu3 %vm351_vm1, %v463_v0 }
  0x47   : > { %2037 = vmatpush.msk.msra.mxu0 %vm351_vm1, %v460_v1  ;;  %2039 = vmatpush.msk.msra.mxu1 %vm351_vm1, %v461_v2 }
  0x4c   : > { %2032 = vmatmul.msk.f32.vlgmr.msrb.gmra.mxu1 %vm468_vm2, %v2210_v52  ;;  %2034 = vmatmul.msk.f32.vlgmr.msrb.gmra.mxu2 %vm468_vm2, %v2210_v52 }
  0x4d   : > { %2036 = vmatmul.msk.f32.vlgmr.msrb.gmra.mxu3 %vm468_vm2, %v2210_v52  ;;  %2049 = vmatpush.msk.msrb.mxu2 %vm351_vm1, %v466_v3 }
  0x4e   : > { %2030 = vmatmul.msk.f32.vlgmr.msrb.gmra.mxu0 %vm468_vm2, %v2210_v52  ;;  %2051 = vmatpush.msk.msrb.mxu3 %vm351_vm1, %v467_v4 }
  0x4f   : > { %2045 = vmatpush.msk.msrb.mxu0 %vm351_vm1, %v464_v5  ;;  %2047 = vmatpush.msk.msrb.mxu1 %vm351_vm1, %v465_v6 }
  0x54   : > { %2040 = vmatmul.msk.f32.vlgmr.msra.gmra.mxu1 %vm468_vm2, %v2210_v52  ;;  %2042 = vmatmul.msk.f32.vlgmr.msra.gmra.mxu2 %vm468_vm2, %v2210_v52 }
  0x55   : > { %2044 = vmatmul.msk.f32.vlgmr.msra.gmra.mxu3 %vm468_vm2, %v2210_v52 }
  0x56   : > { %2038 = vmatmul.msk.f32.vlgmr.msra.gmra.mxu0 %vm468_vm2, %v2210_v52 }
  0x5c   : > { %2048 = vmatmul.msk.f32.vlgmr.msrb.gmra.mxu1 %vm468_vm2, %v2210_v52  ;;  %2050 = vmatmul.msk.f32.vlgmr.msrb.gmra.mxu2 %vm468_vm2, %v2210_v52 }
  0x5d   : > { %2052 = vmatmul.msk.f32.vlgmr.msrb.gmra.mxu3 %vm468_vm2, %v2210_v52 }
  0x5e   : > { %2046 = vmatmul.msk.f32.vlgmr.msrb.gmra.mxu0 %vm468_vm2, %v2210_v52 }
  0xa1   : > { %v573_v7 = vpop.f32.mrf.mxu1 }
  0xa2   : > { %v1278_v8 = vrot.slane %v573_v7, 4  ;;  %v1178_v10 = vsel %vm351_vm1, %v573_v7, 0.0 }
  0xa3   : > { %v553_v9 = vpop.f32.mrf.mxu0 }
  0xa4   : > { %v1177_v11 = vsel %vm351_vm1, %v553_v9, 0.0  ;;  %v1294_v12 = vsel %vm351_vm1, %v553_v9, %v1278_v8 }
  0xa5   : > { %1332 = vst [vmem:[%s2345_s11] sm:$0xff] %v1294_v12  ;;  %v1179_v13 = vadd.f32 %v1178_v10, %v1177_v11 }
  0xa7   : > { %v593_v52 = vpop.f32.mrf.mxu2 }
  0xa8   : > { %v1180_v14 = vsel %vm351_vm1, %v593_v52, 0.0  ;;  %v613_v15 = vpop.f32.mrf.mxu3 }
  0xa9   : > { %v1181_v16 = vadd.f32 %v1180_v14, %v1179_v13  ;;  %v1182_v17 = vsel %vm351_vm1, %v613_v15, 0.0  ;;  %v1279_v18 = vrot.slane %v613_v15, 4  ;;  %v653_v19 = vpop.f32.mrf.mxu1 }
  0xaa   : > { %v1280_v20 = vrot.slane %v653_v19, 4  ;;  %v1186_v24 = vsel %vm351_vm1, %v653_v19, 0.0 }
  0xab   : > { %v1183_v21 = vadd.f32 %v1182_v17, %v1181_v16  ;;  %v1295_v22 = vsel %vm351_vm1, %v593_v52, %v1279_v18  ;;  %v633_v23 = vpop.f32.mrf.mxu0 }
  0xac   : > { %1333 = vst [vmem:[%s2345_s11 + $0x8] sm:$0xff] %v1295_v22  ;;  %v1184_v25 = vsel %vm351_vm1, %v633_v23, 0.0  ;;  %v1296_v26 = vsel %vm351_vm1, %v633_v23, %v1280_v20 }
  0xad   : > { %v1185_v27 = vadd.f32 %v1184_v25, %v1183_v21  ;;  %1334 = vst [vmem:[%s2345_s11 + $0x10] sm:$0xff] %v1296_v26 }
  0xaf   : > { %v673_v28 = vpop.f32.mrf.mxu2  ;;  %v1187_v29 = vadd.f32 %v1186_v24, %v1185_v27 }
  0xb0   : > { %v1188_v30 = vsel %vm351_vm1, %v673_v28, 0.0  ;;  %v693_v31 = vpop.f32.mrf.mxu3 }
  0xb1   : > { %v1189_v32 = vadd.f32 %v1188_v30, %v1187_v29  ;;  %v1190_v33 = vsel %vm351_vm1, %v693_v31, 0.0  ;;  %v1281_v34 = vrot.slane %v693_v31, 4  ;;  %v733_v35 = vpop.f32.mrf.mxu1 }
  0xb2   : > { %v1282_v36 = vrot.slane %v733_v35, 4  ;;  %v1194_v40 = vsel %vm351_vm1, %v733_v35, 0.0 }
  0xb3   : > { %v1191_v37 = vadd.f32 %v1190_v33, %v1189_v32  ;;  %v1297_v38 = vsel %vm351_vm1, %v673_v28, %v1281_v34  ;;  %v713_v39 = vpop.f32.mrf.mxu0 }
  0xb4   : > { %1335 = vst [vmem:[%s2345_s11 + $0x18] sm:$0xff] %v1297_v38  ;;  %v1192_v41 = vsel %vm351_vm1, %v713_v39, 0.0  ;;  %v1298_v42 = vsel %vm351_vm1, %v713_v39, %v1282_v36 }
  0xb5   : > { %v1193_v43 = vadd.f32 %v1192_v41, %v1191_v37  ;;  %1336 = vst [vmem:[%s2345_s11 + $0x20] sm:$0xff] %v1298_v42 }
  0xb7   : > { %v753_v44 = vpop.f32.mrf.mxu2  ;;  %v1195_v45 = vadd.f32 %v1194_v40, %v1193_v43 }
  0xb8   : > { %v1196_v46 = vsel %vm351_vm1, %v753_v44, 0.0  ;;  %v773_v47 = vpop.f32.mrf.mxu3 }
  0xb9   : > { %v1197_v48 = vadd.f32 %v1196_v46, %v1195_v45  ;;  %v1198_v49 = vsel %vm351_vm1, %v773_v47, 0.0  ;;  %v1283_v50 = vrot.slane %v773_v47, 4  ;;  %v813_v51 = vpop.f32.mrf.mxu1 }
  0xba   : > { %v1284_v53 = vrot.slane %v813_v51, 4  ;;  %v1202_v57 = vsel %vm351_vm1, %v813_v51, 0.0 }
  0xbb   : > { %v1199_v54 = vadd.f32 %v1198_v49, %v1197_v48  ;;  %v1299_v55 = vsel %vm351_vm1, %v753_v44, %v1283_v50  ;;  %v793_v56 = vpop.f32.mrf.mxu0 }
  0xbc   : > { %1337 = vst [vmem:[%s2345_s11 + $0x28] sm:$0xff] %v1299_v55  ;;  %v1200_v58 = vsel %vm351_vm1, %v793_v56, 0.0  ;;  %v1300_v59 = vsel %vm351_vm1, %v793_v56, %v1284_v53 }
  0xbd   : > { %v1201_v60 = vadd.f32 %v1200_v58, %v1199_v54  ;;  %1338 = vst [vmem:[%s2345_s11 + $0x30] sm:$0xff] %v1300_v59 }
  0xbf   : > { %v833_v61 = vpop.f32.mrf.mxu2  ;;  %v1203_v62 = vadd.f32 %v1202_v57, %v1201_v60 }
  0xc0   : > { %v1204_v63 = vsel %vm351_vm1, %v833_v61, 0.0  ;;  %v853_v0 = vpop.f32.mrf.mxu3 }
  0xc1   : > { %v1205_v1 = vadd.f32 %v1204_v63, %v1203_v62  ;;  %v1206_v2 = vsel %vm351_vm1, %v853_v0, 0.0  ;;  %v1285_v3 = vrot.slane %v853_v0, 4  ;;  %v893_v4 = vpop.f32.mrf.mxu1 }
  0xc2   : > { %v1286_v5 = vrot.slane %v893_v4, 4  ;;  %v1210_v9 = vsel %vm351_vm1, %v893_v4, 0.0 }
  0xc3   : > { %v1207_v6 = vadd.f32 %v1206_v2, %v1205_v1  ;;  %v1301_v7 = vsel %vm351_vm1, %v833_v61, %v1285_v3  ;;  %v873_v8 = vpop.f32.mrf.mxu0 }
  0xc4   : > { %1339 = vst [vmem:[%s2345_s11 + $0x38] sm:$0xff] %v1301_v7  ;;  %v1208_v10 = vsel %vm351_vm1, %v873_v8, 0.0  ;;  %v1302_v11 = vsel %vm351_vm1, %v873_v8, %v1286_v5 }
  0xc5   : > { %v1209_v12 = vadd.f32 %v1208_v10, %v1207_v6  ;;  %1340 = vst [vmem:[%s2345_s11 + $0x40] sm:$0xff] %v1302_v11  ;;  %v1176_v6 = vld [vmem:[#allocation2] sm:$0xf]  ;;  %v2119_v10 = vmov (%p1348_p6), 0  }
  0xc6   : > { %2089 = vset.pattern.permute.xlu0 (%p1348_p6), %v2119_v10  ;;  %2090 = vset.pattern.permute.xlu1 (%p1348_p6), %v2119_v10 }
  0xc7   : > { %v913_v13 = vpop.f32.mrf.mxu2  ;;  %v1211_v52 = vadd.f32 %v1210_v9, %v1209_v12  ;;  %2091 = vset.pattern.permute.xlu2 (%p1348_p6), %v2119_v10  ;;  %v2120_v12 = vmov (%p1348_p6), 839922192  }
  0xc8   : > { %v1212_v14 = vsel %vm351_vm1, %v913_v13, 0.0  ;;  %v933_v15 = vpop.f32.mrf.mxu3 }
  0xc9   : > { %v1213_v16 = vadd.f32 %v1212_v14, %v1211_v52  ;;  %v1214_v17 = vsel %vm351_vm1, %v933_v15, 0.0  ;;  %v1287_v18 = vrot.slane %v933_v15, 4  ;;  %v973_v19 = vpop.f32.mrf.mxu1 }
  0xca   : > { %v1288_v20 = vrot.slane %v973_v19, 4  ;;  %v1218_v24 = vsel %vm351_vm1, %v973_v19, 0.0 }
  0xcb   : > { %v1215_v21 = vadd.f32 %v1214_v17, %v1213_v16  ;;  %v1303_v22 = vsel %vm351_vm1, %v913_v13, %v1287_v18  ;;  %v953_v23 = vpop.f32.mrf.mxu0  ;;  %v1392_v13 = vunpack.c.l.s4 (%p1348_p6), %v2120_v12 }
  0xcc   : > { %1341 = vst [vmem:[%s2345_s11 + $0x48] sm:$0xff] %v1303_v22  ;;  %v1216_v25 = vsel %vm351_vm1, %v953_v23, 0.0  ;;  %v1304_v26 = vsel %vm351_vm1, %v953_v23, %v1288_v20 }
  0xcd   : > { %v1217_v27 = vadd.f32 %v1216_v25, %v1215_v21  ;;  %1342 = vst [vmem:[%s2345_s11 + $0x50] sm:$0xff] %v1304_v26  ;;  %v2417_v52 = vunpack.c.0.s8 (%p1348_p6), %v1392_v13 }
  0xcf   : > { %v993_v28 = vpop.f32.mrf.mxu2  ;;  %v1219_v29 = vadd.f32 %v1218_v24, %v1217_v27 }
  0xd0   : > { %v1220_v30 = vsel %vm351_vm1, %v993_v28, 0.0  ;;  %v1013_v31 = vpop.f32.mrf.mxu3 }
  0xd1   : > { %v1221_v32 = vadd.f32 %v1220_v30, %v1219_v29  ;;  %v1222_v33 = vsel %vm351_vm1, %v1013_v31, 0.0  ;;  %v1289_v34 = vrot.slane %v1013_v31, 4  ;;  %v1053_v35 = vpop.f32.mrf.mxu1 }
  0xd2   : > { %v1290_v36 = vrot.slane %v1053_v35, 4  ;;  %v1226_v40 = vsel %vm351_vm1, %v1053_v35, 0.0 }
  0xd3   : > { %v1223_v37 = vadd.f32 %v1222_v33, %v1221_v32  ;;  %v1305_v38 = vsel %vm351_vm1, %v993_v28, %v1289_v34  ;;  %v1033_v39 = vpop.f32.mrf.mxu0 }
  0xd4   : > { %1343 = vst [vmem:[%s2345_s11 + $0x58] sm:$0xff] %v1305_v38  ;;  %v1224_v41 = vsel %vm351_vm1, %v1033_v39, 0.0  ;;  %v1306_v42 = vsel %vm351_vm1, %v1033_v39, %v1290_v36 }
  0xd5   : > { %v1225_v43 = vadd.f32 %v1224_v41, %v1223_v37  ;;  %1344 = vst [vmem:[%s2345_s11 + $0x60] sm:$0xff] %v1306_v42 }
  0xd7   : > { %v1073_v44 = vpop.f32.mrf.mxu2  ;;  %v1227_v45 = vadd.f32 %v1226_v40, %v1225_v43 }
  0xd8   : > { %v1228_v46 = vsel %vm351_vm1, %v1073_v44, 0.0  ;;  %v1093_v47 = vpop.f32.mrf.mxu3 }
  0xd9   : > { %v1229_v48 = vadd.f32 %v1228_v46, %v1227_v45  ;;  %v1230_v49 = vsel %vm351_vm1, %v1093_v47, 0.0  ;;  %v1291_v50 = vrot.slane %v1093_v47, 4  ;;  %v1133_v51 = vpop.f32.mrf.mxu1 }
  0xda   : > { %v1292_v53 = vrot.slane %v1133_v51, 4  ;;  %v1234_v57 = vsel %vm351_vm1, %v1133_v51, 0.0 }
  0xdb   : > { %v1231_v54 = vadd.f32 %v1230_v49, %v1229_v48  ;;  %v1307_v55 = vsel %vm351_vm1, %v1073_v44, %v1291_v50  ;;  %v1113_v56 = vpop.f32.mrf.mxu0 }
  0xdc   : > { %1345 = vst [vmem:[%s2345_s11 + $0x68] sm:$0xff] %v1307_v55  ;;  %v1232_v58 = vsel %vm351_vm1, %v1113_v56, 0.0  ;;  %v1308_v59 = vsel %vm351_vm1, %v1113_v56, %v1292_v53 }
  0xdd   : > { %v1233_v60 = vadd.f32 %v1232_v58, %v1231_v54  ;;  %1346 = vst [vmem:[%s2345_s11 + $0x70] sm:$0xff] %v1308_v59 }
  0xdf   : > { %v1153_v61 = vpop.f32.mrf.mxu2  ;;  %v1235_v62 = vadd.f32 %v1234_v57, %v1233_v60 }
  0xe0   : > { %v1236_v63 = vsel %vm351_vm1, %v1153_v61, 0.0  ;;  %v1173_v0 = vpop.f32.mrf.mxu3 }
  0xe1   : > { %v1237_v1 = vadd.f32 %v1236_v63, %v1235_v62  ;;  %v1238_v2 = vsel %vm351_vm1, %v1173_v0, 0.0  ;;  %v1293_v3 = vrot.slane %v1173_v0, 4 }
  0xe3   : > { %v1309_v4 = vsel %vm351_vm1, %v1153_v61, %v1293_v3  ;;  %v1239_v5 = vadd.f32 %v1238_v2, %v1237_v1 }
  0xe4   : > { %1347 = vst [vmem:[%s2345_s11 + $0x78] sm:$0xff] %v1309_v4 }
  0xe5   : > { %1240 = vadd.xlane.f32.xlu0 %v1239_v5 }
  0xeb   : > { %v2425_v16 = vld [vmem:[%s2958_s5] sm:$0xff] (%p1348_p6)  ;;  %v2430_v17 = vld [vmem:[%s2958_s5 + $0x8] sm:$0xff] (%p1348_p6)  ;;  %v2435_v18 = vld [vmem:[%s2958_s5 + $0x10] sm:$0xff] (%p1348_p6) }
  0xec   : > { %v2440_v19 = vld [vmem:[%s2958_s5 + $0x18] sm:$0xff] (%p1348_p6)  ;;  %v2453_v28 = vld [vmem:[%s2958_s5 + $0x20] sm:$0xff] (%p1348_p6)  ;;  %v2458_v29 = vld [vmem:[%s2958_s5 + $0x28] sm:$0xff] (%p1348_p6) }
  0xed   : > { %v2463_v30 = vld [vmem:[%s2958_s5 + $0x30] sm:$0xff] (%p1348_p6)  ;;  %v2468_v31 = vld [vmem:[%s2958_s5 + $0x38] sm:$0xff] (%p1348_p6)  ;;  %v2483_v51 = vld [vmem:[%s2958_s5 + $0x40] sm:$0xff] (%p1348_p6) }
  0xee   : > { %v2489_v54 = vld [vmem:[%s2958_s5 + $0x48] sm:$0xff] (%p1348_p6)  ;;  %v2494_v56 = vld [vmem:[%s2958_s5 + $0x50] sm:$0xff] (%p1348_p6)  ;;  %v2500_v58 = vld [vmem:[%s2958_s5 + $0x58] sm:$0xff] (%p1348_p6) }
 0x157   : > { %1352 = sbr.rel (!%p1348_p6) target bundleno = 895 (0x37f), region = 48 }
 0x158   : > { %v1241_v7 = vpop.xlane.xlu0 %1240 }
 0x159   : > { %v1242_v8 = vadd.f32 %v1241_v7, %v1176_v6 }
 0x15b   : > { %1244 = vst.msk [vmem:[#allocation2] sm:$0xf] %vm1243_vm3, %v1242_v8 }
 0x162   : > { %v1353_v9 = vld [vmem:[#allocation2] sm:$0xf] }
 0x163   : > { %v2414_v11 = vmul.f32 0.00012207031, %v1353_v9 }
 0x165   : > { %1389 = vperm.xlu0 %2089, %v2414_v11  }
 0x1d7   : > { %v1390_v14 = vpop.permute.xlu0 %1389 }
 0x1d8   : > { %v2420_v15 = vperm.slane %v1390_v14, %v2417_v52 }
 0x1da   : > { %v1396_v20 = vsub.f32 %v2425_v16, %v2420_v15  ;;  %v1397_v21 = vsub.f32 %v2430_v17, %v2420_v15  ;;  %v1398_v22 = vsub.f32 %v2435_v18, %v2420_v15  ;;  %v1399_v23 = vsub.f32 %v2440_v19, %v2420_v15 }
 0x1db   : > { %v1400_v32 = vsub.f32 %v2453_v28, %v2420_v15  ;;  %v1401_v33 = vsub.f32 %v2458_v29, %v2420_v15  ;;  %v1402_v34 = vsub.f32 %v2463_v30, %v2420_v15  ;;  %v1403_v37 = vsub.f32 %v2468_v31, %v2420_v15 }
 0x1dc   : > { %v1428_v24 = vmul.f32 %v1396_v20, %v1396_v20  ;;  %v1429_v25 = vmul.f32 %v1397_v21, %v1397_v21  ;;  %v1430_v26 = vmul.f32 %v1398_v22, %v1398_v22  ;;  %v1431_v27 = vmul.f32 %v1399_v23, %v1399_v23 }
 0x1dd   : > { %v1432_v40 = vmul.f32 %v1400_v32, %v1400_v32  ;;  %v1433_v43 = vmul.f32 %v1401_v33, %v1401_v33  ;;  %v1434_v46 = vmul.f32 %v1402_v34, %v1402_v34  ;;  %v1435_v49 = vmul.f32 %v1403_v37, %v1403_v37  ;;  %v2528_v33 = vld [vmem:[%s2958_s5 + $0x70] sm:$0xff] }
 0x1de   : > { %1492 = vst [vmem:[#allocation1] ss:$2 sm:$0xff] %v1428_v24  ;;  %v1404_v59 = vsub.f32 %v2483_v51, %v2420_v15  ;;  %v1405_v61 = vsub.f32 %v2489_v54, %v2420_v15  ;;  %v1406_v63 = vsub.f32 %v2494_v56, %v2420_v15  ;;  %v1407_v4 = vsub.f32 %v2500_v58, %v2420_v15 }
 0x1df   : > { %1494 = vst [vmem:[#allocation1 + $0x10] ss:$2 sm:$0xff] %v1429_v25  ;;  %v2517_v25 = vld [vmem:[%s2958_s5 + $0x60] sm:$0xff] }
 0x1e0   : > { %1496 = vst [vmem:[#allocation1 + $0x20] ss:$2 sm:$0xff] %v1430_v26  ;;  %v1436_v7 = vmul.f32 %v1404_v59, %v1404_v59  ;;  %v1437_v12 = vmul.f32 %v1405_v61, %v1405_v61  ;;  %v1438_v20 = vmul.f32 %v1406_v63, %v1406_v63  ;;  %v1439_v23 = vmul.f32 %v1407_v4, %v1407_v4 }
 0x1e1   : > { %1498 = vst [vmem:[#allocation1 + $0x30] ss:$2 sm:$0xff] %v1431_v27  ;;  %v2522_v27 = vld [vmem:[%s2958_s5 + $0x68] sm:$0xff] }
 0x1e5   : > { %v1499_v35 = vld.sshfl [vmem:[#allocation1] sm:$0xff pattern:$0x75316420]  ;;  %v1500_v36 = vld.sshfl [vmem:[#allocation1 + $0x8] sm:$0xff pattern:$0x75316420] }
 0x1e6   : > { %v1501_v38 = vld.sshfl [vmem:[#allocation1 + $0x10] sm:$0xff pattern:$0x75316420]  ;;  %v1502_v39 = vld.sshfl [vmem:[#allocation1 + $0x18] sm:$0xff pattern:$0x75316420] }
 0x1e7   : > { %v1503_v41 = vld.sshfl [vmem:[#allocation1 + $0x20] sm:$0xff pattern:$0x75316420]  ;;  %v1504_v42 = vld.sshfl [vmem:[#allocation1 + $0x28] sm:$0xff pattern:$0x75316420] }
 0x1e8   : > { %v1505_v44 = vld.sshfl [vmem:[#allocation1 + $0x30] sm:$0xff pattern:$0x75316420]  ;;  %v1506_v45 = vld.sshfl [vmem:[#allocation1 + $0x38] sm:$0xff pattern:$0x75316420] }
 0x1e9   : > { %1507 = vst [vmem:[#allocation1] ss:$2 sm:$0xff] %v1432_v40  ;;  %v1655_v47 = vsel %vm351_vm1, %v1499_v35, 0.0  ;;  %v1656_v48 = vsel %vm351_vm1, %v1500_v36, 0.0  ;;  %v1658_v53 = vsel %vm351_vm1, %v1501_v38, 0.0  ;;  %v1660_v57 = vsel %vm351_vm1, %v1502_v39, 0.0 }
 0x1ea   : > { %1508 = vst [vmem:[#allocation1 + $0x10] ss:$2 sm:$0xff] %v1433_v43  ;;  %v1657_v50 = vadd.f32 %v1656_v48, %v1655_v47  ;;  %v1662_v62 = vsel %vm351_vm1, %v1503_v41, 0.0  ;;  %v1664_v2 = vsel %vm351_vm1, %v1504_v42, 0.0  ;;  %v1666_v3 = vsel %vm351_vm1, %v1505_v44, 0.0  ;;  %v2533_v35 = vld [vmem:[%s2958_s5 + $0x78] sm:$0xff] }
 0x1eb   : > { %1509 = vst [vmem:[#allocation1 + $0x20] ss:$2 sm:$0xff] %v1434_v46  ;;  %v1668_v24 = vsel %vm351_vm1, %v1506_v45, 0.0  ;;  %v1408_v36 = vsub.f32 %v2517_v25, %v2420_v15  ;;  %v1409_v38 = vsub.f32 %v2522_v27, %v2420_v15  ;;  %v1410_v40 = vsub.f32 %v2528_v33, %v2420_v15 }
 0x1ec   : > { %1510 = vst [vmem:[#allocation1 + $0x30] ss:$2 sm:$0xff] %v1435_v49  ;;  %v1659_v55 = vadd.f32 %v1658_v53, %v1657_v50  ;;  %v1411_v44 = vsub.f32 %v2533_v35, %v2420_v15 }
 0x1ed   : > { %v1440_v48 = vmul.f32 %v1408_v36, %v1408_v36  ;;  %v1441_v53 = vmul.f32 %v1409_v38, %v1409_v38 }
 0x1ee   : > { %v1661_v60 = vadd.f32 %v1660_v57, %v1659_v55  ;;  %v1443_v63 = vmul.f32 %v1411_v44, %v1411_v44  ;;  %v2597_v44 = vld [vmem:[%s2958_s5 + $0xa8] sm:$0xff] }
 0x1f0   : > { %v1511_v0 = vld.sshfl [vmem:[#allocation1] sm:$0xff pattern:$0x75316420]  ;;  %v1663_v1 = vadd.f32 %v1662_v62, %v1661_v60  ;;  %v1512_v5 = vld.sshfl [vmem:[#allocation1 + $0x8] sm:$0xff pattern:$0x75316420]  ;;  %v1442_v60 = vmul.f32 %v1410_v40, %v1410_v40 }
 0x1f1   : > { %v1513_v6 = vld.sshfl [vmem:[#allocation1 + $0x10] sm:$0xff pattern:$0x75316420]  ;;  %v1514_v8 = vld.sshfl [vmem:[#allocation1 + $0x18] sm:$0xff pattern:$0x75316420] }
 0x1f2   : > { %v1515_v9 = vld.sshfl [vmem:[#allocation1 + $0x20] sm:$0xff pattern:$0x75316420]  ;;  %v1665_v10 = vadd.f32 %v1664_v2, %v1663_v1  ;;  %v1516_v13 = vld.sshfl [vmem:[#allocation1 + $0x28] sm:$0xff pattern:$0x75316420] }
 0x1f3   : > { %v1517_v14 = vld.sshfl [vmem:[#allocation1 + $0x30] sm:$0xff pattern:$0x75316420]  ;;  %v1518_v21 = vld.sshfl [vmem:[#allocation1 + $0x38] sm:$0xff pattern:$0x75316420] }
 0x1f4   : > { %1519 = vst [vmem:[#allocation1] ss:$2 sm:$0xff] %v1436_v7  ;;  %v1667_v22 = vadd.f32 %v1666_v3, %v1665_v10  ;;  %v1670_v32 = vsel %vm351_vm1, %v1511_v0, 0.0  ;;  %v1672_v37 = vsel %vm351_vm1, %v1512_v5, 0.0  ;;  %v1674_v42 = vsel %vm351_vm1, %v1513_v6, 0.0  ;;  %v2552_v1 = vld [vmem:[%s2958_s5 + $0x88] sm:$0xff] }
 0x1f5   : > { %1520 = vst [vmem:[#allocation1 + $0x10] ss:$2 sm:$0xff] %v1437_v12  ;;  %v1676_v43 = vsel %vm351_vm1, %v1514_v8, 0.0  ;;  %v1678_v62 = vsel %vm351_vm1, %v1515_v9, 0.0  ;;  %v1680_v2 = vsel %vm351_vm1, %v1516_v13, 0.0  ;;  %v2558_v3 = vld [vmem:[%s2958_s5 + $0x90] sm:$0xff]  ;;  %v1413_v8 = vsub.f32 %v2552_v1, %v2420_v15 }
 0x1f6   : > { %1521 = vst [vmem:[#allocation1 + $0x20] ss:$2 sm:$0xff] %v1438_v20  ;;  %v1669_v26 = vadd.f32 %v1668_v24, %v1667_v22  ;;  %v2563_v5 = vld [vmem:[%s2958_s5 + $0x98] sm:$0xff]  ;;  %v1682_v6 = vsel %vm351_vm1, %v1517_v14, 0.0  ;;  %v2569_v7 = vld [vmem:[%s2958_s5 + $0x80] sm:$0xff]  ;;  %v1414_v10 = vsub.f32 %v2558_v3, %v2420_v15  ;;  %v1684_v12 = vsel %vm351_vm1, %v1518_v21, 0.0 }
 0x1f7   : > { %1522 = vst [vmem:[#allocation1 + $0x30] ss:$2 sm:$0xff] %v1439_v23  ;;  %v1415_v13 = vsub.f32 %v2563_v5, %v2420_v15  ;;  %v1412_v23 = vsub.f32 %v2569_v7, %v2420_v15 }
 0x1f8   : > { %v1671_v34 = vadd.f32 %v1670_v32, %v1669_v26  ;;  %v1445_v32 = vmul.f32 %v1413_v8, %v1413_v8  ;;  %v1446_v38 = vmul.f32 %v1414_v10, %v1414_v10 }
 0x1fa   : > { %v1673_v39 = vadd.f32 %v1672_v37, %v1671_v34 }
 0x1fb   : > { %v1523_v41 = vld.sshfl [vmem:[#allocation1] sm:$0xff pattern:$0x75316420]  ;;  %v1524_v45 = vld.sshfl [vmem:[#allocation1 + $0x8] sm:$0xff pattern:$0x75316420] }
 0x1fc   : > { %v1525_v46 = vld.sshfl [vmem:[#allocation1 + $0x10] sm:$0xff pattern:$0x75316420]  ;;  %v1675_v47 = vadd.f32 %v1674_v42, %v1673_v39  ;;  %v1526_v49 = vld.sshfl [vmem:[#allocation1 + $0x18] sm:$0xff pattern:$0x75316420] }
 0x1fd   : > { %v1527_v50 = vld.sshfl [vmem:[#allocation1 + $0x20] sm:$0xff pattern:$0x75316420]  ;;  %v1528_v55 = vld.sshfl [vmem:[#allocation1 + $0x28] sm:$0xff pattern:$0x75316420] }
 0x1fe   : > { %v1529_v57 = vld.sshfl [vmem:[#allocation1 + $0x30] sm:$0xff pattern:$0x75316420]  ;;  %v1677_v59 = vadd.f32 %v1676_v43, %v1675_v47  ;;  %v2546_v61 = vld.sshfl [vmem:[#allocation1 + $0x38] sm:$0xff pattern:$0x75316420] }
 0x1ff   : > { %1531 = vst [vmem:[#allocation1] ss:$2 sm:$0xff] %v1440_v48  ;;  %v1686_v14 = vsel %vm351_vm1, %v1523_v41, 0.0  ;;  %v1688_v22 = vsel %vm351_vm1, %v1524_v45, 0.0  ;;  %v1447_v41 = vmul.f32 %v1415_v13, %v1415_v13  ;;  %v1444_v45 = vmul.f32 %v1412_v23, %v1412_v23  ;;  %v2603_v48 = vld [vmem:[%s2958_s5 + $0xb0] sm:$0xff] }
 0x200   : > { %1532 = vst [vmem:[#allocation1 + $0x10] ss:$2 sm:$0xff] %v1441_v53  ;;  %v1679_v0 = vadd.f32 %v1678_v62, %v1677_v59  ;;  %v1690_v47 = vsel %vm351_vm1, %v1525_v46, 0.0  ;;  %v2608_v59 = vld [vmem:[%s2958_s5 + $0xb8] sm:$0xff]  ;;  %v2614_v62 = vld [vmem:[%s2958_s5 + $0xa0] sm:$0xff]  ;;  %v1417_v46 = vsub.f32 %v2597_v44, %v2420_v15  ;;  %v1698_v8 = vsel %vm351_vm1, %v1529_v57, 0.0 }
 0x201   : > { %1533 = vst [vmem:[#allocation1 + $0x20] ss:$2 sm:$0xff] %v1442_v60  ;;  %v1692_v60 = vsel %vm351_vm1, %v1526_v49, 0.0  ;;  %v1696_v49 = vsel %vm351_vm1, %v1528_v55, 0.0  ;;  %v1700_v55 = vsel %vm351_vm1, %v2546_v61, 0.0 }
 0x202   : > { %1534 = vst [vmem:[#allocation1 + $0x30] ss:$2 sm:$0xff] %v1443_v63  ;;  %v1681_v4 = vadd.f32 %v1680_v2, %v1679_v0  ;;  %v1418_v0 = vsub.f32 %v2603_v48, %v2420_v15  ;;  %v1694_v2 = vsel %vm351_vm1, %v1527_v50, 0.0  ;;  %v1449_v13 = vmul.f32 %v1417_v46, %v1417_v46 }
 0x204   : > { %v1683_v9 = vadd.f32 %v1682_v6, %v1681_v4  ;;  %v1419_v4 = vsub.f32 %v2608_v59, %v2420_v15  ;;  %v1450_v23 = vmul.f32 %v1418_v0, %v1418_v0 }
 0x206   : > { %v1685_v20 = vadd.f32 %v1684_v12, %v1683_v9  ;;  %v1535_v34 = vld.sshfl [vmem:[#allocation1] sm:$0xff pattern:$0x75316420]  ;;  %v1536_v42 = vld.sshfl [vmem:[#allocation1 + $0x8] sm:$0xff pattern:$0x75316420]  ;;  %v1416_v9 = vsub.f32 %v2614_v62, %v2420_v15 }
 0x207   : > { %v2582_v24 = vld.sshfl [vmem:[#allocation1 + $0x10] sm:$0xff pattern:$0x75316420]  ;;  %v2584_v26 = vld.sshfl [vmem:[#allocation1 + $0x18] sm:$0xff pattern:$0x75316420] }
 0x208   : > { %v2586_v36 = vld.sshfl [vmem:[#allocation1 + $0x20] sm:$0xff pattern:$0x75316420]  ;;  %v2588_v21 = vld.sshfl [vmem:[#allocation1 + $0x28] sm:$0xff pattern:$0x75316420]  ;;  %v1687_v37 = vadd.f32 %v1686_v14, %v1685_v20 }
 0x209   : > { %v2590_v39 = vld.sshfl [vmem:[#allocation1 + $0x30] sm:$0xff pattern:$0x75316420]  ;;  %v2592_v40 = vld.sshfl [vmem:[#allocation1 + $0x38] sm:$0xff pattern:$0x75316420] }
 0x20a   : > { %1544 = vst [vmem:[#allocation1 + $0x10] ss:$2 sm:$0xff] %v1445_v32  ;;  %v1689_v43 = vadd.f32 %v1688_v22, %v1687_v37  ;;  %v1451_v37 = vmul.f32 %v1419_v4, %v1419_v4  ;;  %v1702_v46 = vsel %vm351_vm1, %v1535_v34, 0.0 }
 0x20b   : > { %1545 = vst [vmem:[#allocation1 + $0x20] ss:$2 sm:$0xff] %v1446_v38 }
 0x20c   : > { %1546 = vst [vmem:[#allocation1 + $0x30] ss:$2 sm:$0xff] %v1447_v41  ;;  %v1691_v53 = vadd.f32 %v1690_v47, %v1689_v43  ;;  %v1448_v41 = vmul.f32 %v1416_v9, %v1416_v9 }
 0x20d   : > { %1543 = vst [vmem:[#allocation1] ss:$2 sm:$0xff] %v1444_v45 }
 0x20e   : > { %v1693_v63 = vadd.f32 %v1692_v60, %v1691_v53  ;;  %v2635_v53 = vld [vmem:[%s2958_s5 + $0xc0] sm:$0xff]  ;;  %v2640_v60 = vld [vmem:[%s2958_s5 + $0xc8] sm:$0xff] }
 0x20f   : > { %v1420_v34 = vsub.f32 %v2635_v53, %v2420_v15 }
 0x210   : > { %v1695_v6 = vadd.f32 %v1694_v2, %v1693_v63  ;;  %v2647_v63 = vld [vmem:[%s2958_s5 + $0xd0] sm:$0xff] }
 0x211   : > { %v1549_v10 = vld.sshfl [vmem:[#allocation1 + $0x10] sm:$0xff pattern:$0x75316420]  ;;  %v1550_v12 = vld.sshfl [vmem:[#allocation1 + $0x18] sm:$0xff pattern:$0x75316420] }
 0x212   : > { %v1551_v20 = vld.sshfl [vmem:[#allocation1 + $0x20] sm:$0xff pattern:$0x75316420]  ;;  %v1552_v14 = vld.sshfl [vmem:[#allocation1 + $0x28] sm:$0xff pattern:$0x75316420]  ;;  %v1697_v22 = vadd.f32 %v1696_v49, %v1695_v6 }
 0x213   : > { %v1553_v32 = vld.sshfl [vmem:[#allocation1 + $0x30] sm:$0xff pattern:$0x75316420]  ;;  %v2627_v50 = vld.sshfl [vmem:[#allocation1 + $0x38] sm:$0xff pattern:$0x75316420] }
 0x214   : > { %1556 = vst [vmem:[#allocation1 + $0x10] ss:$2 sm:$0xff] %v1449_v13  ;;  %v1699_v38 = vadd.f32 %v1698_v8, %v1697_v22  ;;  %v1547_v57 = vld.sshfl [vmem:[#allocation1] sm:$0xff pattern:$0x75316420]  ;;  %v1723_v4 = vsel %vm351_vm1, %v1549_v10, 0.0  ;;  %v1421_v8 = vsub.f32 %v2640_v60, %v2420_v15  ;;  %v1422_v10 = vsub.f32 %v2647_v63, %v2420_v15 }
 0x215   : > { %1557 = vst [vmem:[#allocation1 + $0x20] ss:$2 sm:$0xff] %v1450_v23  ;;  %v1548_v43 = vld.sshfl [vmem:[#allocation1 + $0x8] sm:$0xff pattern:$0x75316420]  ;;  %v1720_v45 = vsel %vm351_vm1, %v1547_v57, 0.0 }
 0x216   : > { %1558 = vst [vmem:[#allocation1 + $0x30] ss:$2 sm:$0xff] %v1451_v37  ;;  %v1701_v47 = vadd.f32 %v1700_v55, %v1699_v38  ;;  %v1721_v61 = vsel %vm351_vm1, %v1548_v43, 0.0  ;;  %v1704_v6 = vsel %vm351_vm1, %v1536_v42, 0.0  ;;  %v2654_v49 = vld [vmem:[%s2958_s5 + $0xd8] sm:$0xff]  ;;  %v1706_v22 = vsel %vm351_vm1, %v2582_v24, 0.0 }
 0x217   : > { %1555 = vst [vmem:[#allocation1] ss:$2 sm:$0xff] %v1448_v41  ;;  %v1722_v0 = vadd.f32 %v1721_v61, %v1720_v45  ;;  %v1725_v42 = vsel %vm351_vm1, %v1550_v12, 0.0  ;;  %v1708_v23 = vsel %vm351_vm1, %v2584_v26, 0.0  ;;  %v1727_v55 = vsel %vm351_vm1, %v1551_v20, 0.0 }
 0x218   : > { %v1703_v2 = vadd.f32 %v1702_v46, %v1701_v47  ;;  %v1729_v57 = vsel %vm351_vm1, %v1552_v14, 0.0  ;;  %v1423_v43 = vsub.f32 %v2654_v49, %v2420_v15  ;;  %v1452_v47 = vmul.f32 %v1420_v34, %v1420_v34 }
 0x219   : > { %v1724_v9 = vadd.f32 %v1723_v4, %v1722_v0  ;;  %v1710_v20 = vsel %vm351_vm1, %v2586_v36, 0.0  ;;  %v1731_v34 = vsel %vm351_vm1, %v1553_v32, 0.0  ;;  %v1733_v32 = vsel %vm351_vm1, %v2627_v50, 0.0 }
 0x21a   : > { %v1705_v13 = vadd.f32 %v1704_v6, %v1703_v2  ;;  %v1453_v2 = vmul.f32 %v1421_v8, %v1421_v8  ;;  %v1454_v6 = vmul.f32 %v1422_v10, %v1422_v10  ;;  %v2681_v8 = vld [vmem:[%s2958_s5 + $0xe0] sm:$0xff]  ;;  %v2686_v10 = vld [vmem:[%s2958_s5 + $0xe8] sm:$0xff] }
 0x21b   : > { %v1561_v37 = vld.sshfl [vmem:[#allocation1 + $0x10] sm:$0xff pattern:$0x75316420]  ;;  %v1726_v38 = vadd.f32 %v1725_v42, %v1724_v9  ;;  %v1562_v45 = vld.sshfl [vmem:[#allocation1 + $0x18] sm:$0xff pattern:$0x75316420] }
 0x21c   : > { %v1707_v41 = vadd.f32 %v1706_v22, %v1705_v13  ;;  %v1563_v24 = vld.sshfl [vmem:[#allocation1 + $0x20] sm:$0xff pattern:$0x75316420]  ;;  %v1564_v61 = vld.sshfl [vmem:[#allocation1 + $0x28] sm:$0xff pattern:$0x75316420]  ;;  %v1455_v22 = vmul.f32 %v1423_v43, %v1423_v43  ;;  %v1424_v43 = vsub.f32 %v2681_v8, %v2420_v15 }
 0x21d   : > { %v2671_v46 = vld.sshfl [vmem:[#allocation1 + $0x30] sm:$0xff pattern:$0x75316420]  ;;  %v1728_v12 = vadd.f32 %v1727_v55, %v1726_v38  ;;  %v1566_v14 = vld.sshfl [vmem:[#allocation1 + $0x38] sm:$0xff pattern:$0x75316420] }
 0x21e   : > { %v1709_v0 = vadd.f32 %v1708_v23, %v1707_v41  ;;  %v1559_v26 = vld.sshfl [vmem:[#allocation1] sm:$0xff pattern:$0x75316420]  ;;  %v1560_v4 = vld.sshfl [vmem:[#allocation1 + $0x8] sm:$0xff pattern:$0x75316420] }
 0x21f   : > { %1567 = vst [vmem:[#allocation1] ss:$2 sm:$0xff] %v1452_v47  ;;  %v1730_v9 = vadd.f32 %v1729_v57, %v1728_v12  ;;  %v1712_v42 = vsel %vm351_vm1, %v2588_v21, 0.0  ;;  %v1714_v21 = vsel %vm351_vm1, %v2590_v39, 0.0  ;;  %v2695_v38 = vld [vmem:[%s2958_s5 + $0xf0] sm:$0xff]  ;;  %v2700_v41 = vld [vmem:[%s2958_s5 + $0xf8] sm:$0xff]  ;;  %v1425_v47 = vsub.f32 %v2686_v10, %v2420_v15 }
 0x220   : > { %v1711_v13 = vadd.f32 %v1710_v20, %v1709_v0  ;;  %1568 = vst [vmem:[#allocation1 + $0x10] ss:$2 sm:$0xff] %v1453_v2  ;;  %v1735_v50 = vsel %vm351_vm1, %v1559_v26, 0.0  ;;  %v1716_v39 = vsel %vm351_vm1, %v2592_v40, 0.0  ;;  %v1426_v2 = vsub.f32 %v2695_v38, %v2420_v15 }
 0x221   : > { %1569 = vst [vmem:[#allocation1 + $0x20] ss:$2 sm:$0xff] %v1454_v6  ;;  %v1732_v23 = vadd.f32 %v1731_v34, %v1730_v9  ;;  %v1737_v6 = vsel %vm351_vm1, %v1560_v4, 0.0  ;;  %v1739_v9 = vsel %vm351_vm1, %v1561_v37, 0.0  ;;  %v1456_v40 = vmul.f32 %v1424_v43, %v1424_v43 }
 0x222   : > { %v1713_v36 = vadd.f32 %v1712_v42, %v1711_v13  ;;  %1570 = vst [vmem:[#allocation1 + $0x30] ss:$2 sm:$0xff] %v1455_v22  ;;  %v1427_v13 = vsub.f32 %v2700_v41, %v2420_v15  ;;  %v1741_v4 = vsel %vm351_vm1, %v1562_v45, 0.0  ;;  %v1743_v15 = vsel %vm351_vm1, %v1563_v24, 0.0 }
 0x223   : > { %v1734_v55 = vadd.f32 %v1733_v32, %v1732_v23  ;;  %v1745_v43 = vsel %vm351_vm1, %v1564_v61, 0.0 }
 0x224   : > { %v1715_v57 = vadd.f32 %v1714_v21, %v1713_v36  ;;  %v1457_v36 = vmul.f32 %v1425_v47, %v1425_v47  ;;  %v1459_v37 = vmul.f32 %v1427_v13, %v1427_v13  ;;  %v1747_v47 = vsel %vm351_vm1, %v2671_v46, 0.0 }
 0x225   : > { %v1736_v12 = vadd.f32 %v1735_v50, %v1734_v55 }
 0x226   : > { %v1717_v0 = vadd.f32 %v1716_v39, %v1715_v57  ;;  %v1571_v20 = vld.sshfl [vmem:[#allocation1] sm:$0xff pattern:$0x75316420]  ;;  %v1572_v26 = vld.sshfl [vmem:[#allocation1 + $0x8] sm:$0xff pattern:$0x75316420]  ;;  %v1458_v57 = vmul.f32 %v1426_v2, %v1426_v2 }
 0x227   : > { %v1573_v22 = vld.sshfl [vmem:[#allocation1 + $0x10] sm:$0xff pattern:$0x75316420]  ;;  %v1738_v34 = vadd.f32 %v1737_v6, %v1736_v12  ;;  %v1574_v42 = vld.sshfl [vmem:[#allocation1 + $0x18] sm:$0xff pattern:$0x75316420] }
 0x228   : > { %1718 = vadd.xlane.f32.xlu0 %v1717_v0  ;;  %v1575_v23 = vld.sshfl [vmem:[#allocation1 + $0x20] sm:$0xff pattern:$0x75316420]  ;;  %v1576_v32 = vld.sshfl [vmem:[#allocation1 + $0x28] sm:$0xff pattern:$0x75316420] }
 0x229   : > { %v1577_v21 = vld.sshfl [vmem:[#allocation1 + $0x30] sm:$0xff pattern:$0x75316420]  ;;  %v1740_v55 = vadd.f32 %v1739_v9, %v1738_v34  ;;  %v1578_v50 = vld.sshfl [vmem:[#allocation1 + $0x38] sm:$0xff pattern:$0x75316420] }
 0x22a   : > { %1579 = vst [vmem:[#allocation1] ss:$2 sm:$0xff] %v1456_v40  ;;  %v1749_v2 = vsel %vm351_vm1, %v1566_v14, 0.0  ;;  %v1751_v45 = vsel %vm351_vm1, %v1571_v20, 0.0  ;;  %v1753_v34 = vsel %vm351_vm1, %v1572_v26, 0.0  ;;  %v1755_v24 = vsel %vm351_vm1, %v1573_v22, 0.0 }
 0x22b   : > { %1580 = vst [vmem:[#allocation1 + $0x10] ss:$2 sm:$0xff] %v1457_v36  ;;  %v1742_v39 = vadd.f32 %v1741_v4, %v1740_v55  ;;  %v1757_v55 = vsel %vm351_vm1, %v1574_v42, 0.0  ;;  %v1761_v46 = vsel %vm351_vm1, %v1576_v32, 0.0  ;;  %v1763_v14 = vsel %vm351_vm1, %v1577_v21, 0.0 }
 0x22c   : > { %1581 = vst [vmem:[#allocation1 + $0x20] ss:$2 sm:$0xff] %v1458_v57  ;;  %v1759_v57 = vsel %vm351_vm1, %v1575_v23, 0.0 }
 0x22d   : > { %1582 = vst [vmem:[#allocation1 + $0x30] ss:$2 sm:$0xff] %v1459_v37  ;;  %v1744_v12 = vadd.f32 %v1743_v15, %v1742_v39  ;;  %v1765_v15 = vsel %vm351_vm1, %v1578_v50, 0.0 }
 0x22f   : > { %v1746_v0 = vadd.f32 %v1745_v43, %v1744_v12 }
 0x231   : > { %v1748_v6 = vadd.f32 %v1747_v47, %v1746_v0  ;;  %v1583_v39 = vld.sshfl [vmem:[#allocation1] sm:$0xff pattern:$0x75316420]  ;;  %v1584_v26 = vld.sshfl [vmem:[#allocation1 + $0x8] sm:$0xff pattern:$0x75316420] }
 0x232   : > { %v1767_v22 = vsel %vm351_vm1, %v1583_v39, 0.0  ;;  %v1585_v43 = vld.sshfl [vmem:[#allocation1 + $0x10] sm:$0xff pattern:$0x75316420]  ;;  %v1769_v42 = vsel %vm351_vm1, %v1584_v26, 0.0 }
 0x233   : > { %v1750_v9 = vadd.f32 %v1749_v2, %v1748_v6  ;;  %v1586_v47 = vld.sshfl [vmem:[#allocation1 + $0x18] sm:$0xff pattern:$0x75316420]  ;;  %v1771_v6 = vsel %vm351_vm1, %v1585_v43, 0.0 }
 0x234   : > { %v1587_v32 = vld.sshfl [vmem:[#allocation1 + $0x20] sm:$0xff pattern:$0x75316420]  ;;  %v1773_v21 = vsel %vm351_vm1, %v1586_v47, 0.0 }
 0x235   : > { %v1752_v13 = vadd.f32 %v1751_v45, %v1750_v9  ;;  %v1588_v9 = vld.sshfl [vmem:[#allocation1 + $0x28] sm:$0xff pattern:$0x75316420]  ;;  %v1775_v50 = vsel %vm351_vm1, %v1587_v32, 0.0 }
 0x237   : > { %v1754_v40 = vadd.f32 %v1753_v34, %v1752_v13  ;;  %v1589_v13 = vld.sshfl [vmem:[#allocation1 + $0x30] sm:$0xff pattern:$0x75316420] }
 0x239   : > { %v1756_v36 = vadd.f32 %v1755_v24, %v1754_v40  ;;  %v1777_v40 = vsel %vm351_vm1, %v1588_v9, 0.0  ;;  %v1590_v24 = vld.sshfl [vmem:[#allocation1 + $0x38] sm:$0xff pattern:$0x75316420] }
 0x23b   : > { %v1758_v61 = vadd.f32 %v1757_v55, %v1756_v36  ;;  %v1779_v55 = vsel %vm351_vm1, %v1589_v13, 0.0 }
 0x23d   : > { %v1760_v4 = vadd.f32 %v1759_v57, %v1758_v61  ;;  %v1781_v57 = vsel %vm351_vm1, %v1590_v24, 0.0 }
 0x23f   : > { %v1762_v37 = vadd.f32 %v1761_v46, %v1760_v4 }
 0x241   : > { %v1764_v20 = vadd.f32 %v1763_v14, %v1762_v37 }
 0x243   : > { %v1766_v12 = vadd.f32 %v1765_v15, %v1764_v20 }
 0x245   : > { %v1768_v0 = vadd.f32 %v1767_v22, %v1766_v12 }
 0x247   : > { %v1770_v23 = vadd.f32 %v1769_v42, %v1768_v0 }
 0x249   : > { %v1772_v2 = vadd.f32 %v1771_v6, %v1770_v23  ;;  %v1790_v23 = vld [vmem:[%s2956_s3] sm:$0xf] }
 0x24b   : > { %v1774_v45 = vadd.f32 %v1773_v21, %v1772_v2  ;;  %v1803_v21 = vld [vmem:[%s2957_s4] sm:$0xf] }
 0x24d   : > { %v1776_v34 = vadd.f32 %v1775_v50, %v1774_v45 }
 0x24f   : > { %v1778_v36 = vadd.f32 %v1777_v40, %v1776_v34 }
 0x251   : > { %v1780_v61 = vadd.f32 %v1779_v55, %v1778_v36 }
 0x253   : > { %v1782_v4 = vadd.f32 %v1781_v57, %v1780_v61 }
 0x255   : > { %1783 = vadd.xlane.f32.xlu1 %v1782_v4 }
 0x29b   : > { %v1719_v46 = vpop.xlane.xlu0 %1718 }
 0x29c   : > { %v1785_v14 = vsel %vm351_vm1, %v1719_v46, 0.0 }
 0x2c8   : > { %v1784_v37 = vpop.xlane.xlu1 %1783 }
 0x2c9   : > { %v1786_v39 = vsel %vm351_vm1, %v1784_v37, 0.0 }
 0x2ca   : > { %v1787_v20 = vadd.f32 %v1786_v39, %v1785_v14 }
 0x2cc   : > { %v1788_v15 = vmul.f32 0.00012207031, %v1787_v20 }
 0x2ce   : > { %v1789_v26 = vmax.f32 %v1788_v15, 0.0 }
 0x2d0   : > { %v1791_v12 = vadd.f32 1e-05, %v1789_v26 }
 0x2d2   : > { %2092 = vrsqrt.f32 %v1791_v12  ;;  %vm1798_vm5 = vweird.f32 %v1791_v12 }
 0x2d8   : > { %v2093_v22 = vpop.eup %2092 }
 0x2d9   : > { %v1793_v43 = vmul.f32 %v2093_v22, %v1791_v12  ;;  %vm1799_vm4 = vweird.f32 %v2093_v22 }
 0x2da   : > { %vm1800_vm6 = vmor %vm1798_vm5, %vm1799_vm4 }
 0x2db   : > { %v1794_v0 = vmul.f32 %v2093_v22, %v1793_v43 }
 0x2dd   : > { %v1795_v42 = vmul.f32 0.5, %v1794_v0 }
 0x2df   : > { %v1796_v47 = vsub.f32 1.5, %v1795_v42 }
 0x2e1   : > { %v1797_v6 = vmul.f32 %v2093_v22, %v1796_v47 }
 0x2e3   : > { %v1801_v32 = vsel %vm1800_vm6, %v2093_v22, %v1797_v6 }
 0x2e4   : > { %v1802_v2 = vmul.f32 %v1801_v32, %v1790_v23 }
 0x2e6   : > { %1808 = vperm.xlu1 %2090, %v1802_v2   ;;  %v1804_v9 = vmul.f32 %v1802_v2, %v2414_v11 }
 0x2e8   : > { %v1805_v45 = vsub.f32 %v1803_v21, %v1804_v9 }
 0x2ea   : > { %1849 = vperm.xlu2 %2091, %v1805_v45  }
 0x344   : > { %v1850_v34 = vpop.permute.xlu2 %1849 }
 0x345   : > { %v2758_v11 = vperm.slane %v1850_v34, %v2417_v52 }
 0x358   : > { %v1809_v50 = vpop.permute.xlu1 %1808 }
 0x359   : > { %v2747_v13 = vperm.slane %v1809_v50, %v2417_v52 }
 0x35b   : > { %v1815_v40 = vmul.f32 %v2747_v13, %v2425_v16  ;;  %v1816_v24 = vmul.f32 %v2747_v13, %v2430_v17  ;;  %v1817_v36 = vmul.f32 %v2747_v13, %v2435_v18  ;;  %v1818_v55 = vmul.f32 %v2747_v13, %v2440_v19 }
 0x35c   : > { %v1819_v61 = vmul.f32 %v2747_v13, %v2453_v28  ;;  %v1820_v57 = vmul.f32 %v2747_v13, %v2458_v29  ;;  %v1821_v16 = vmul.f32 %v2747_v13, %v2463_v30  ;;  %v1822_v19 = vmul.f32 %v2747_v13, %v2468_v31 }
 0x35d   : > { %v1856_v17 = vadd.f32 %v2758_v11, %v1815_v40  ;;  %v1857_v4 = vadd.f32 %v2758_v11, %v1816_v24  ;;  %v1858_v18 = vadd.f32 %v2758_v11, %v1817_v36  ;;  %v1859_v52 = vadd.f32 %v2758_v11, %v1818_v55 }
 0x35e   : > { %v1823_v28 = vmul.f32 %v2747_v13, %v2483_v51  ;;  %v1860_v46 = vadd.f32 %v2758_v11, %v1819_v61  ;;  %v1824_v29 = vmul.f32 %v2747_v13, %v2489_v54  ;;  %v1861_v30 = vadd.f32 %v2758_v11, %v1820_v57 }
 0x35f   : > { %1888 = vst [vmem:[%s2958_s5] sm:$0xff] %v1856_v17  ;;  %v1825_v31 = vmul.f32 %v2747_v13, %v2494_v56  ;;  %v1862_v51 = vadd.f32 %v2758_v11, %v1821_v16  ;;  %v1826_v37 = vmul.f32 %v2747_v13, %v2500_v58  ;;  %v1863_v54 = vadd.f32 %v2758_v11, %v1822_v19 }
 0x360   : > { %1889 = vst [vmem:[%s2958_s5 + $0x8] sm:$0xff] %v1857_v4  ;;  %v1827_v14 = vmul.f32 %v2747_v13, %v2517_v25  ;;  %v1864_v56 = vadd.f32 %v2758_v11, %v1823_v28  ;;  %v1828_v39 = vmul.f32 %v2747_v13, %v2522_v27  ;;  %v1865_v58 = vadd.f32 %v2758_v11, %v1824_v29 }
 0x361   : > { %1890 = vst [vmem:[%s2958_s5 + $0x10] sm:$0xff] %v1858_v18  ;;  %v1829_v20 = vmul.f32 %v2747_v13, %v2528_v33  ;;  %v1866_v25 = vadd.f32 %v2758_v11, %v1825_v31  ;;  %v1830_v15 = vmul.f32 %v2747_v13, %v2533_v35  ;;  %v1867_v27 = vadd.f32 %v2758_v11, %v1826_v37 }
 0x362   : > { %1891 = vst [vmem:[%s2958_s5 + $0x18] sm:$0xff] %v1859_v52  ;;  %v1831_v26 = vmul.f32 %v2747_v13, %v2569_v7  ;;  %v1868_v33 = vadd.f32 %v2758_v11, %v1827_v14  ;;  %v1832_v12 = vmul.f32 %v2747_v13, %v2552_v1  ;;  %v1869_v35 = vadd.f32 %v2758_v11, %v1828_v39 }
 0x363   : > { %1892 = vst [vmem:[%s2958_s5 + $0x20] sm:$0xff] %v1860_v46  ;;  %v1833_v22 = vmul.f32 %v2747_v13, %v2558_v3  ;;  %v1870_v7 = vadd.f32 %v2758_v11, %v1829_v20  ;;  %v1834_v43 = vmul.f32 %v2747_v13, %v2563_v5  ;;  %v1871_v1 = vadd.f32 %v2758_v11, %v1830_v15 }
 0x364   : > { %1893 = vst [vmem:[%s2958_s5 + $0x28] sm:$0xff] %v1861_v30  ;;  %v1835_v0 = vmul.f32 %v2747_v13, %v2614_v62  ;;  %v1872_v3 = vadd.f32 %v2758_v11, %v1831_v26  ;;  %v1836_v42 = vmul.f32 %v2747_v13, %v2597_v44  ;;  %v1873_v5 = vadd.f32 %v2758_v11, %v1832_v12 }
 0x365   : > { %1894 = vst [vmem:[%s2958_s5 + $0x30] sm:$0xff] %v1862_v51  ;;  %v1837_v47 = vmul.f32 %v2747_v13, %v2603_v48  ;;  %v1874_v62 = vadd.f32 %v2758_v11, %v1833_v22  ;;  %v1838_v23 = vmul.f32 %v2747_v13, %v2608_v59  ;;  %v1875_v44 = vadd.f32 %v2758_v11, %v1834_v43 }
 0x366   : > { %1895 = vst [vmem:[%s2958_s5 + $0x38] sm:$0xff] %v1863_v54  ;;  %v1839_v6 = vmul.f32 %v2747_v13, %v2635_v53  ;;  %v1876_v48 = vadd.f32 %v2758_v11, %v1835_v0  ;;  %v1840_v32 = vmul.f32 %v2747_v13, %v2640_v60  ;;  %v1877_v59 = vadd.f32 %v2758_v11, %v1836_v42 }
 0x367   : > { %1896 = vst [vmem:[%s2958_s5 + $0x40] sm:$0xff] %v1864_v56  ;;  %v1841_v2 = vmul.f32 %v2747_v13, %v2647_v63  ;;  %v1878_v53 = vadd.f32 %v2758_v11, %v1837_v47  ;;  %v1842_v21 = vmul.f32 %v2747_v13, %v2654_v49  ;;  %v1879_v60 = vadd.f32 %v2758_v11, %v1838_v23 }
 0x368   : > { %1897 = vst [vmem:[%s2958_s5 + $0x48] sm:$0xff] %v1865_v58  ;;  %v1843_v9 = vmul.f32 %v2747_v13, %v2681_v8  ;;  %v1880_v63 = vadd.f32 %v2758_v11, %v1839_v6  ;;  %v1844_v45 = vmul.f32 %v2747_v13, %v2686_v10  ;;  %v1881_v49 = vadd.f32 %v2758_v11, %v1840_v32 }
 0x369   : > { %1898 = vst [vmem:[%s2958_s5 + $0x50] sm:$0xff] %v1866_v25  ;;  %v1845_v50 = vmul.f32 %v2747_v13, %v2695_v38  ;;  %v1882_v8 = vadd.f32 %v2758_v11, %v1841_v2  ;;  %v1846_v34 = vmul.f32 %v2747_v13, %v2700_v41  ;;  %v1883_v10 = vadd.f32 %v2758_v11, %v1842_v21 }
 0x36a   : > { %1899 = vst [vmem:[%s2958_s5 + $0x58] sm:$0xff] %v1867_v27  ;;  %v1884_v40 = vadd.f32 %v2758_v11, %v1843_v9  ;;  %v1885_v38 = vadd.f32 %v2758_v11, %v1844_v45 }
 0x36b   : > { %1900 = vst [vmem:[%s2958_s5 + $0x60] sm:$0xff] %v1868_v33  ;;  %v1886_v41 = vadd.f32 %v2758_v11, %v1845_v50  ;;  %v1887_v13 = vadd.f32 %v2758_v11, %v1846_v34 }
 0x36c   : > { %1901 = vst [vmem:[%s2958_s5 + $0x68] sm:$0xff] %v1869_v35 }
 0x36d   : > { %1902 = vst [vmem:[%s2958_s5 + $0x70] sm:$0xff] %v1870_v7 }
 0x36e   : > { %1903 = vst [vmem:[%s2958_s5 + $0x78] sm:$0xff] %v1871_v1 }
 0x36f   : > { %1904 = vst [vmem:[%s2958_s5 + $0x80] sm:$0xff] %v1872_v3 }
 0x370   : > { %1905 = vst [vmem:[%s2958_s5 + $0x88] sm:$0xff] %v1873_v5 }
 0x371   : > { %1906 = vst [vmem:[%s2958_s5 + $0x90] sm:$0xff] %v1874_v62 }
 0x372   : > { %1907 = vst [vmem:[%s2958_s5 + $0x98] sm:$0xff] %v1875_v44 }
 0x373   : > { %1908 = vst [vmem:[%s2958_s5 + $0xa0] sm:$0xff] %v1876_v48 }
 0x374   : > { %1909 = vst [vmem:[%s2958_s5 + $0xa8] sm:$0xff] %v1877_v59 }
 0x375   : > { %1910 = vst [vmem:[%s2958_s5 + $0xb0] sm:$0xff] %v1878_v53 }
 0x376   : > { %1911 = vst [vmem:[%s2958_s5 + $0xb8] sm:$0xff] %v1879_v60 }
 0x377   : > { %1912 = vst [vmem:[%s2958_s5 + $0xc0] sm:$0xff] %v1880_v63 }
 0x378   : > { %1913 = vst [vmem:[%s2958_s5 + $0xc8] sm:$0xff] %v1881_v49 }
 0x379   : > { %1914 = vst [vmem:[%s2958_s5 + $0xd0] sm:$0xff] %v1882_v8 }
 0x37a   : > { %1915 = vst [vmem:[%s2958_s5 + $0xd8] sm:$0xff] %v1883_v10 }
 0x37b   : > { %1916 = vst [vmem:[%s2958_s5 + $0xe0] sm:$0xff] %v1884_v40 }
 0x37c   : > { %1917 = vst [vmem:[%s2958_s5 + $0xe8] sm:$0xff] %v1885_v38 }
 0x37d   : > { %1918 = vst [vmem:[%s2958_s5 + $0xf0] sm:$0xff] %v1886_v41 }
 0x37e   : > { %1919 = vst [vmem:[%s2958_s5 + $0xf8] sm:$0xff] %v1887_v13 }
 0x37f PF: > { %s15_s20 = sadd.s32 1, %s2116_s20   ;;  %s2959_s18 = smov %s2112_s19 }
 0x380   : > { %p12_p7 = scmp.ge.s32.totalorder %s15_s20, 4   ;;  %s2960_s19 = smov %s2962_s21 }
 0x382   :  { %14 = sbr.rel (!%p12_p7) target bundleno = 2 (0x2), region = 84 }

</bundles_post_ra>
